<compile_context>
chip_gen: v7x
topology: tpu7x:2x2x1
jax: 0.10.0
libtpu: 0.0.40
codegen_flags: <defaults>
</compile_context>

<pallas_src>
import functools
import math

import jax
import jax.numpy as jnp
import numpy as np
from jax.experimental import pallas as pl
from jax.experimental.pallas import tpu as pltpu

# -------------------- module hyper-parameters (PyTorch defaults) -------------
EPS = 1e-6
BETA = 0.001
MEAN_WEIGHT = 0.5
OFFSET = 5.0


def _round_up(x, m):
    return ((x + m - 1) // m) * m


def _softplus(z):
    # numerically-stable softplus: max(z,0) + log(1 + exp(-|z|))
    return jnp.maximum(z, 0.0) + jnp.log(1.0 + jnp.exp(-jnp.abs(z)))


# -------------------------------- kernels ------------------------------------
def _vib_train_kernel(x_ref, w_ref, b_ref, noise_ref, ft_ref, loss_ref, *,
                      tile_n, dout_pad, dout):
    # Fused mean/var projection: ONE bf16 MXU pass over x, f32 accumulation.
    xb = x_ref[...].astype(jnp.bfloat16)                 # in-kernel cast (no wrapper pass)
    y = jnp.dot(xb, w_ref[...], preferred_element_type=jnp.float32)
    ft_mean = y[:, :dout_pad]                            # lane-aligned (dout_pad % 128 == 0)
    ft_sigma = y[:, dout_pad:] + b_ref[...]

    # scale = softplus(sigma - offset) + eps
    scale = _softplus(ft_sigma - OFFSET) + EPS

    # ft = mw*mean + (1-mw)*(mean + scale*z)  ==  mean + (1-mw)*scale*z
    ft = ft_mean + (1.0 - MEAN_WEIGHT) * scale * noise_ref[...].astype(jnp.float32)
    ft_ref[...] = ft.astype(ft_ref.dtype)

    # KL( N(mu, scale) || N(0, 1) ) = 0.5*(scale^2 + mu^2 - 1) - log(scale)
    kl = 0.5 * (scale * scale + ft_mean * ft_mean - 1.0) - jnp.log(scale)

    # Mask padded columns only (static code path); padded-row contribution is
    # removed analytically in the wrapper.
    if dout != dout_pad:
        col = jax.lax.broadcasted_iota(jnp.int32, (tile_n, dout_pad), 1)
        kl = jnp.where(col < dout, kl, 0.0)

    # Log-depth pairwise tree fold of rows down to one (8, dout_pad) vreg tile.
    acc = kl
    rows = tile_n
    while rows > 8:
        half = rows // 2
        acc = acc[:half, :] + acc[half:rows, :]
        rows = half
    loss_ref[...] = acc


def _vib_eval_kernel(x_ref, w_ref, ft_ref):
    xb = x_ref[...].astype(jnp.bfloat16)
    ft_ref[...] = jnp.dot(xb, w_ref[...],
                          preferred_element_type=jnp.float32).astype(ft_ref.dtype)


# -------------------------------- wrappers -----------------------------------
def vib_pack_params(w_mean, w_var, b_var):
    """Call-invariant weight packing (do this ONCE, not per forward call).

    w_mean/w_var: (Din, Dout) f32 (pre-transposed nn.Linear weights),
    b_var: (1, Dout) f32.  Returns (w_cat_bf16, wm_pad_bf16, b_pad_f32, dout)."""
    din, dout = w_mean.shape
    dout_pad = _round_up(dout, 128)       # lane-dense output -> unmasked full-width stores
    wm_pad = jnp.pad(w_mean, ((0, 0), (0, dout_pad - dout)))
    wv_pad = jnp.pad(w_var, ((0, 0), (0, dout_pad - dout)))
    w_cat = jnp.concatenate([wm_pad, wv_pad], axis=1).astype(jnp.bfloat16)
    b_pad = jnp.pad(b_var, ((0, 0), (0, dout_pad - dout))).astype(jnp.float32)
    return w_cat, wm_pad.astype(jnp.bfloat16), b_pad, dout


def _vmem_limit_bytes(tile_n, din, dout_pad, training):
    f32, bf16 = 4, 2
    x_blk = tile_n * din * f32
    ft_blk = tile_n * dout_pad * f32
    noise_blk = tile_n * dout_pad * bf16
    loss_blk = 8 * dout_pad * f32
    w = din * (2 * dout_pad if training else dout_pad) * bf16
    b = dout_pad * f32
    need = 2 * (x_blk + ft_blk + noise_blk + loss_blk + w + b)   # double-buffered I/O + weights
    if training:
        need += 6 * tile_n * dout_pad * f32                      # f32 intermediates headroom
    # Cap at 32 MiB so the same choice is valid on v5e/v6e (128 MiB) and v7x (64 MiB).
    return int(min(32 * 1024 * 1024, max(8 * 1024 * 1024, 2 * need)))


@functools.partial(jax.jit, static_argnames=("dout", "training", "tile_n"))
def vib_forward(in_ft, w_cat, wm_pad, b_pad, key, *, dout, training=True, tile_n=512):
    """in_ft: (N, Din) f32; packed params from vib_pack_params; key: PRNG key for
    the reparameterization noise.  Returns (ft, info_loss) in training mode, ft in
    eval mode."""
    n, din = in_ft.shape
    dout_pad = b_pad.shape[1]
    assert tile_n >= 16 and (tile_n & (tile_n - 1)) == 0, "tile_n must be a power of two >= 16"

    n_pad = _round_up(n, tile_n)
    num_blocks = n_pad // tile_n
    x_pad = in_ft if n_pad == n else jnp.pad(in_ft, ((0, n_pad - n), (0, 0)))

    cparams = pltpu.CompilerParams(
        dimension_semantics=("parallel",),   # batch grid shards across both TCs on v7x
        vmem_limit_bytes=_vmem_limit_bytes(tile_n, din, dout_pad, training))

    if training:
        # bf16 noise halves the extra HBM stream vs f32; cast up in-kernel.
        noise = jax.random.normal(key, (n_pad, dout_pad), dtype=jnp.bfloat16)

        kernel = functools.partial(_vib_train_kernel, tile_n=tile_n,
                                   dout_pad=dout_pad, dout=dout)
        ft_pad, loss_parts = pl.pallas_call(
            kernel,
            out_shape=(
                jax.ShapeDtypeStruct((n_pad, dout_pad), jnp.float32),
                jax.ShapeDtypeStruct((num_blocks * 8, dout_pad), jnp.float32),
            ),
            grid_spec=pltpu.PrefetchScalarGridSpec(
                num_scalar_prefetch=0,
                grid=(num_blocks,),
                in_specs=[
                    pl.BlockSpec((tile_n, din), lambda i: (i, 0)),         # x tile (f32)
                    pl.BlockSpec((din, 2 * dout_pad), lambda i: (0, 0)),   # fused W (VMEM-resident)
                    pl.BlockSpec((1, dout_pad), lambda i: (0, 0)),         # bias
                    pl.BlockSpec((tile_n, dout_pad), lambda i: (i, 0)),    # noise tile (bf16)
                ],
                out_specs=(
                    pl.BlockSpec((tile_n, dout_pad), lambda i: (i, 0)),    # ft tile
                    pl.BlockSpec((8, dout_pad), lambda i: (i, 0)),         # KL partials
                ),
            ),
            compiler_params=cparams,
        )(x_pad, w_cat, b_pad, noise)

        ft = ft_pad[:n, :dout]
        total = jnp.sum(loss_parts)
        if n_pad != n:
            # Analytic KL of a zero-padded row: mean = 0, sigma = bias  (same f32
            # formula as the kernel), summed over the valid columns only.
            s0 = _softplus(b_pad[:, :dout] - OFFSET) + EPS
            kl0 = 0.5 * (s0 * s0 - 1.0) - jnp.log(s0)
            total = total - (n_pad - n) * jnp.sum(kl0)
        info_loss = total * (BETA / n)     # beta * sum_j mean_i KL
        return ft, info_loss
    else:
        ft_pad = pl.pallas_call(
            _vib_eval_kernel,
            out_shape=jax.ShapeDtypeStruct((n_pad, dout_pad), jnp.float32),
            grid_spec=pltpu.PrefetchScalarGridSpec(
                num_scalar_prefetch=0,
                grid=(num_blocks,),
                in_specs=[
                    pl.BlockSpec((tile_n, din), lambda i: (i, 0)),
                    pl.BlockSpec((din, dout_pad), lambda i: (0, 0)),
                ],
                out_specs=pl.BlockSpec((tile_n, dout_pad), lambda i: (i, 0)),
            ),
            compiler_params=cparams,
        )(x_pad, wm_pad)
        return ft_pad[:n, :dout]


def vib_reference_stats(in_ft, w_mean, w_var, b_var):
    """Pure-JAX noise-free reference quantities, using the same bf16-rounded inputs
    the kernel feeds the MXU (intentional precision choice)."""
    x = in_ft.astype(jnp.bfloat16).astype(jnp.float32)
    wm = w_mean.astype(jnp.bfloat16).astype(jnp.float32)
    wv = w_var.astype(jnp.bfloat16).astype(jnp.float32)
    ft_mean = x @ wm
    ft_sigma = x @ wv + b_var
    scale = jax.nn.softplus(ft_sigma - OFFSET) + EPS
    kl = 0.5 * (scale ** 2 + ft_mean ** 2 - 1.0) - jnp.log(scale)
    info_loss = jnp.sum(jnp.mean(kl, axis=0)) * BETA
    return ft_mean, scale, info_loss


# -------------------------------- main ---------------------------------------
if __name__ == "__main__":
    # Small demo shapes that still exercise the grid (2 even blocks -> balanced
    # across v7x's 2 TCs), Dout->128 lane padding, and the padded-row correction
    # (500 % 256 != 0).  Production default tile_n is 512.
    N, DIM_IN, DIM_OUT = 500, 96, 48
    TILE_N = 256

    key = jax.random.PRNGKey(0)
    k_x, k_wm, k_wv, k_bv, k_noise = jax.random.split(key, 5)

    # nn.Linear default init: U(-1/sqrt(Din), 1/sqrt(Din)); weights pre-transposed.
    bound = 1.0 / math.sqrt(DIM_IN)
    w_mean = jax.random.uniform(k_wm, (DIM_IN, DIM_OUT), jnp.float32, -bound, bound)
    w_var = jax.random.uniform(k_wv, (DIM_IN, DIM_OUT), jnp.float32, -bound, bound)
    b_var = jax.random.uniform(k_bv, (1, DIM_OUT), jnp.float32, -bound, bound)
    in_ft = jax.random.normal(k_x, (N, DIM_IN), jnp.float32)

    # Pack weights ONCE (call-invariant).
    w_cat, wm_pad, b_pad, dout = vib_pack_params(w_mean, w_var, b_var)

    # Training-mode forward (twice, same key -> must be bitwise identical).
    ft, info_loss = vib_forward(in_ft, w_cat, wm_pad, b_pad, k_noise,
                                dout=DIM_OUT, training=True, tile_n=TILE_N)
    jax.block_until_ready((ft, info_loss))
    ft2, _ = vib_forward(in_ft, w_cat, wm_pad, b_pad, k_noise,
                         dout=DIM_OUT, training=True, tile_n=TILE_N)
    jax.block_until_ready(ft2)

    # Eval-mode forward.
    ft_eval = vib_forward(in_ft, w_cat, wm_pad, b_pad, k_noise,
                          dout=DIM_OUT, training=False, tile_n=TILE_N)
    jax.block_until_ready(ft_eval)

    # Noise-free reference quantities.
    ft_mean_ref, scale_ref, loss_ref_val = vib_reference_stats(in_ft, w_mean, w_var, b_var)

    # 1) Eval path: plain projection must match the reference matmul.
    np.testing.assert_allclose(np.asarray(ft_eval), np.asarray(ft_mean_ref),
                               rtol=1e-4, atol=1e-4)
    # 2) KL info loss (noise-independent) must match the reference.
    np.testing.assert_allclose(float(info_loss), float(loss_ref_val),
                               rtol=5e-3, atol=1e-4)
    # 3) Training output is deterministic for a fixed key.
    assert np.array_equal(np.asarray(ft), np.asarray(ft2)), "training output not deterministic"
    # 4) Training output structure: ft = mean + (1-mw)*scale*z with z ~ N(0,1).
    z = (np.asarray(ft) - np.asarray(ft_mean_ref)) / ((1.0 - MEAN_WEIGHT) * np.asarray(scale_ref))
    assert np.all(np.isfinite(z)), "non-finite training output"
    assert abs(float(z.mean())) < 0.1, f"noise mean off: {z.mean()}"
    assert abs(float(z.std()) - 1.0) < 0.2, f"noise std off: {z.std()}"

    print("KERNEL_OK")
</pallas_src>

<mosaic_0001>
module attributes {stable_mosaic.version = 11 : i64} {
  func.func @_vib_train_kernel(%arg0: i32, %arg1: memref<256x96xf32, #tpu.memory_space<vmem>>, %arg2: memref<96x256xbf16, #tpu.memory_space<vmem>>, %arg3: memref<1x128xf32, #tpu.memory_space<vmem>>, %arg4: memref<256x128xbf16, #tpu.memory_space<vmem>>, %arg5: memref<256x128xf32, #tpu.memory_space<vmem>>, %arg6: memref<8x128xf32, #tpu.memory_space<vmem>>) attributes {dimension_semantics = [#tpu.dimension_semantics<parallel>], iteration_bounds = array<i64: 2>, scalar_prefetch = 0 : i64, scratch_operands = 0 : i64, tpu.core_type = #tpu.core_type<tc>, window_params = [{transform_indices = @transform_0, window_bounds = array<i64: 256, 96>}, {pipeline_mode = #tpu.pipeline_mode<synchronous>, transform_indices = @transform_1, window_bounds = array<i64: 96, 256>}, {pipeline_mode = #tpu.pipeline_mode<synchronous>, transform_indices = @transform_2, window_bounds = array<i64: 1, 128>}, {transform_indices = @transform_3, window_bounds = array<i64: 256, 128>}, {transform_indices = @transform_4, window_bounds = array<i64: 256, 128>}, {transform_indices = @transform_5, window_bounds = array<i64: 8, 128>}]} {
    %c0 = arith.constant 0 : index
    %c0_0 = arith.constant 0 : index
    %0 = vector.load %arg1[%c0, %c0_0] : memref<256x96xf32, #tpu.memory_space<vmem>>, vector<256x96xf32>
    %1 = arith.truncf %0 : vector<256x96xf32> to vector<256x96xbf16>
    %c0_1 = arith.constant 0 : index
    %c0_2 = arith.constant 0 : index
    %2 = vector.load %arg2[%c0_1, %c0_2] : memref<96x256xbf16, #tpu.memory_space<vmem>>, vector<96x256xbf16>
    %cst = arith.constant dense<0.000000e+00> : vector<256x256xf32>
    %3 = tpu.matmul %1, %2, %cst {dimension_numbers = #tpu.dot_dimension_numbers<[1], [0], [0], [1], [0, 0, 1, 1], [], []>} : vector<256x96xbf16>, vector<96x256xbf16>, vector<256x256xf32> -> vector<256x256xf32>
    %4 = vector.extract_strided_slice %3 {offsets = [0, 0], sizes = [256, 128], strides = [1, 1]} : vector<256x256xf32> to vector<256x128xf32>
    %5 = vector.extract_strided_slice %3 {offsets = [0, 128], sizes = [256, 128], strides = [1, 1]} : vector<256x256xf32> to vector<256x128xf32>
    %c0_3 = arith.constant 0 : index
    %c0_4 = arith.constant 0 : index
    %6 = vector.load %arg3[%c0_3, %c0_4] : memref<1x128xf32, #tpu.memory_space<vmem>>, vector<1x128xf32>
    %7 = vector.broadcast %6 : vector<1x128xf32> to vector<256x128xf32>
    %8 = arith.addf %5, %7 : vector<256x128xf32>
    %cst_5 = arith.constant 5.000000e+00 : f32
    %9 = vector.broadcast %cst_5 : f32 to vector<256x128xf32>
    %10 = arith.subf %8, %9 : vector<256x128xf32>
    %cst_6 = arith.constant 0.000000e+00 : f32
    %11 = vector.broadcast %cst_6 : f32 to vector<256x128xf32>
    %12 = arith.maximumf %10, %11 : vector<256x128xf32>
    %13 = math.absf %10 : vector<256x128xf32>
    %cst_7 = arith.constant 0.000000e+00 : f32
    %14 = vector.broadcast %cst_7 : f32 to vector<256x128xf32>
    %15 = arith.subf %14, %13 : vector<256x128xf32>
    %16 = math.exp %15 : vector<256x128xf32>
    %cst_8 = arith.constant 1.000000e+00 : f32
    %17 = vector.broadcast %cst_8 : f32 to vector<256x128xf32>
    %18 = arith.addf %17, %16 : vector<256x128xf32>
    %19 = math.log %18 : vector<256x128xf32>
    %20 = arith.addf %12, %19 : vector<256x128xf32>
    %cst_9 = arith.constant 9.99999997E-7 : f32
    %21 = vector.broadcast %cst_9 : f32 to vector<256x128xf32>
    %22 = arith.addf %20, %21 : vector<256x128xf32>
    %cst_10 = arith.constant 5.000000e-01 : f32
    %23 = vector.broadcast %cst_10 : f32 to vector<256x128xf32>
    %24 = arith.mulf %23, %22 : vector<256x128xf32>
    %c0_11 = arith.constant 0 : index
    %c0_12 = arith.constant 0 : index
    %25 = vector.load %arg4[%c0_11, %c0_12] : memref<256x128xbf16, #tpu.memory_space<vmem>>, vector<256x128xbf16>
    %26 = arith.extf %25 : vector<256x128xbf16> to vector<256x128xf32>
    %27 = arith.mulf %24, %26 : vector<256x128xf32>
    %28 = arith.addf %4, %27 : vector<256x128xf32>
    %c0_13 = arith.constant 0 : index
    %c0_14 = arith.constant 0 : index
    %29 = vector.load %arg5[%c0_13, %c0_14] : memref<256x128xf32, #tpu.memory_space<vmem>>, vector<256x128xf32>
    tpu.vector_store %arg5[%c0_13, %c0_14], %28 {strides = array<i32>} : memref<256x128xf32, #tpu.memory_space<vmem>>, vector<256x128xf32>,
    %30 = arith.mulf %22, %22 : vector<256x128xf32>
    %31 = arith.mulf %4, %4 : vector<256x128xf32>
    %32 = arith.addf %30, %31 : vector<256x128xf32>
    %cst_15 = arith.constant 1.000000e+00 : f32
    %33 = vector.broadcast %cst_15 : f32 to vector<256x128xf32>
    %34 = arith.subf %32, %33 : vector<256x128xf32>
    %cst_16 = arith.constant 5.000000e-01 : f32
    %35 = vector.broadcast %cst_16 : f32 to vector<256x128xf32>
    %36 = arith.mulf %35, %34 : vector<256x128xf32>
    %37 = math.log %22 : vector<256x128xf32>
    %38 = arith.subf %36, %37 : vector<256x128xf32>
    %39 = tpu.iota {dimensions = array<i32: 1>} : vector<256x128xi32>
    %c48_i32 = arith.constant 48 : i32
    %40 = vector.broadcast %c48_i32 : i32 to vector<256x128xi32>
    %41 = arith.cmpi slt, %39, %40 : vector<256x128xi32>
    %cst_17 = arith.constant 0.000000e+00 : f32
    %42 = vector.broadcast %cst_17 : f32 to vector<256x128xf32>
    %43 = arith.select %41, %38, %42 : vector<256x128xi1>, vector<256x128xf32>
    %44 = vector.extract_strided_slice %43 {offsets = [0, 0], sizes = [128, 128], strides = [1, 1]} : vector<256x128xf32> to vector<128x128xf32>
    %45 = vector.extract_strided_slice %43 {offsets = [128, 0], sizes = [128, 128], strides = [1, 1]} : vector<256x128xf32> to vector<128x128xf32>
    %46 = arith.addf %44, %45 : vector<128x128xf32>
    %47 = vector.extract_strided_slice %46 {offsets = [0, 0], sizes = [64, 128], strides = [1, 1]} : vector<128x128xf32> to vector<64x128xf32>
    %48 = vector.extract_strided_slice %46 {offsets = [64, 0], sizes = [64, 128], strides = [1, 1]} : vector<128x128xf32> to vector<64x128xf32>
    %49 = arith.addf %47, %48 : vector<64x128xf32>
    %50 = vector.extract_strided_slice %49 {offsets = [0, 0], sizes = [32, 128], strides = [1, 1]} : vector<64x128xf32> to vector<32x128xf32>
    %51 = vector.extract_strided_slice %49 {offsets = [32, 0], sizes = [32, 128], strides = [1, 1]} : vector<64x128xf32> to vector<32x128xf32>
    %52 = arith.addf %50, %51 : vector<32x128xf32>
    %53 = vector.extract_strided_slice %52 {offsets = [0, 0], sizes = [16, 128], strides = [1, 1]} : vector<32x128xf32> to vector<16x128xf32>
    %54 = vector.extract_strided_slice %52 {offsets = [16, 0], sizes = [16, 128], strides = [1, 1]} : vector<32x128xf32> to vector<16x128xf32>
    %55 = arith.addf %53, %54 : vector<16x128xf32>
    %56 = vector.extract_strided_slice %55 {offsets = [0, 0], sizes = [8, 128], strides = [1, 1]} : vector<16x128xf32> to vector<8x128xf32>
    %57 = vector.extract_strided_slice %55 {offsets = [8, 0], sizes = [8, 128], strides = [1, 1]} : vector<16x128xf32> to vector<8x128xf32>
    %58 = arith.addf %56, %57 : vector<8x128xf32>
    %c0_18 = arith.constant 0 : index
    %c0_19 = arith.constant 0 : index
    %59 = vector.load %arg6[%c0_18, %c0_19] : memref<8x128xf32, #tpu.memory_space<vmem>>, vector<8x128xf32>
    tpu.vector_store %arg6[%c0_18, %c0_19], %58 {strides = array<i32>} : memref<8x128xf32, #tpu.memory_space<vmem>>, vector<8x128xf32>,
    return
  }
  func.func @transform_0(%arg0: i32) -> (i32, i32) {
    %c0_i32 = arith.constant 0 : i32
    %c0_i32_0 = arith.constant 0 : i32
    return %arg0, %c0_i32 : i32, i32
  }
  func.func @transform_1(%arg0: i32) -> (i32, i32) {
    %c0_i32 = arith.constant 0 : i32
    %c0_i32_0 = arith.constant 0 : i32
    %c0_i32_1 = arith.constant 0 : i32
    return %c0_i32, %c0_i32_0 : i32, i32
  }
  func.func @transform_2(%arg0: i32) -> (i32, i32) {
    %c0_i32 = arith.constant 0 : i32
    %c0_i32_0 = arith.constant 0 : i32
    %c0_i32_1 = arith.constant 0 : i32
    return %c0_i32, %c0_i32_0 : i32, i32
  }
  func.func @transform_3(%arg0: i32) -> (i32, i32) {
    %c0_i32 = arith.constant 0 : i32
    %c0_i32_0 = arith.constant 0 : i32
    return %arg0, %c0_i32 : i32, i32
  }
  func.func @transform_4(%arg0: i32) -> (i32, i32) {
    %c0_i32 = arith.constant 0 : i32
    %c0_i32_0 = arith.constant 0 : i32
    return %arg0, %c0_i32 : i32, i32
  }
  func.func @transform_5(%arg0: i32) -> (i32, i32) {
    %c0_i32 = arith.constant 0 : i32
    %c0_i32_0 = arith.constant 0 : i32
    return %arg0, %c0_i32 : i32, i32
  }
}

</mosaic_0001>

<bundles_post_ra>
// kernel: vib_forward.1
= control target key start
LH: loop header
LB: loop body
LE: loop exit
PB: predicated region body
PF: predicated region fallthrough
CT: control target
= control target key end

     0   :  { %s2086_s18 = smov 0   ;;  %s2981_s0 = inlined_call_operand.vmem [shape: f32[512,96], index: 0, kind: input, shape index: {}]   ;;  %s2982_s1 = inlined_call_operand.vmem [shape: bf16[96,256], index: 1, kind: input, shape index: {}]   ;;  %s2983_s2 = inlined_call_operand.vmem [shape: f32[1,128], index: 2, kind: input, shape index: {}]   ;;  %s2984_s3 = inlined_call_operand.vmem [shape: bf16[512,128], index: 3, kind: input, shape index: {}]   ;;  %s2985_s4 = inlined_call_operand.vmem [shape: f32[512,128], index: 4, kind: output, shape index: {0}]   ;;  %s2986_s5 = inlined_call_operand.vmem [shape: f32[16,128], index: 5, kind: output, shape index: {1}]  }
   0x1 LB: > { %s2092_s19 = sadd.s32 4294967295, %s2053_s18   ;;  %p1633_p0 = scmp.ge.s32.totalorder %s2053_s18, 1  ;;  %s2053_s18 = sphi %s2086_s18, %s16_s18  }
   0x2   : > { %p202_p1 = scmp.lt.s32.totalorder %s2053_s18, 3 }
   0x4   : > { %p203_p2 = pnand %p1633_p0, %p202_p1 }
   0x6   : > { %206 = sbr.rel (%p203_p2) target bundleno = 503 (0x1f7), region = 36 }
   0xd   : > { %v1836_v0 = vld [vmem:[%s2982_s1 + $0x4] ss:$8 sps:$4 sm:$0xff]   ;;  %v1838_v1 = vld [vmem:[%s2982_s1] ss:$8 sps:$4 sm:$0xff]   ;;  %v2055_v2 = vmov 0   ;;  %s1634_s24 = sshll.u32 %s2092_s19, 5 }
   0xe   : > { %463 = vmatprep.mubr.bf16.mxu0 %v2055_v2  ;;  %543 = vmatprep.mubr.bf16.mxu1 %v2055_v2  ;;  %v1839_v3 = vld [vmem:[%s2982_s1 + $0x14] ss:$8 sps:$4 sm:$0xff]   ;;  %v1841_v4 = vld [vmem:[%s2982_s1 + $0x10] ss:$8 sps:$4 sm:$0xff]   ;;  %v1842_v5 = vld [vmem:[%s2982_s1 + $0x24] ss:$8 sps:$4 sm:$0xff]  }
   0xf   : > { %431 = vmatprep.subr.bf16.mxu0 %v1836_v0  ;;  %1815 = vmatprep.subr.bf16.mxu1 %v1836_v0  ;;  %p240_p3 = scmp.lt.s32.totalorder %s1634_s24, 63  ;;  %v1844_v6 = vld [vmem:[%s2982_s1 + $0x20] ss:$8 sps:$4 sm:$0xff]   ;;  %v1845_v7 = vld [vmem:[%s2982_s1 + $0x34] ss:$8 sps:$4 sm:$0xff]   ;;  %vm382_vm0 = vcmask 785408  }
  0x10   : > { %432 = vmatpush1.bf16.msra.mxu0 %v1838_v1  ;;  %1821 = vmatpush1.bf16.msra.mxu1 %v1838_v1  ;;  %v1847_v8 = vld [vmem:[%s2982_s1 + $0x30] ss:$8 sps:$4 sm:$0xff]   ;;  %v1848_v9 = vld [vmem:[%s2982_s1 + $0x44] ss:$8 sps:$4 sm:$0xff]   ;;  %v1850_v10 = vld [vmem:[%s2982_s1 + $0x40] ss:$8 sps:$4 sm:$0xff]  }
  0x11   : > { %433 = vmatprep.subr.bf16.mxu0 %v1839_v3  ;;  %1816 = vmatprep.subr.bf16.mxu1 %v1839_v3  ;;  %s3119_s24 = smov (!%p240_p3, %s1634_s24), 63  ;;  %v1851_v11 = vld [vmem:[%s2982_s1 + $0x54] ss:$8 sps:$4 sm:$0xff]   ;;  %v1853_v12 = vld [vmem:[%s2982_s1 + $0x50] ss:$8 sps:$4 sm:$0xff]   ;;  %v1463_v3 = vlaneseq  ;;  %p257_p4 = scmp.lt.s32.totalorder %s2092_s19, 1 }
  0x12   : > { %s1635_s14 = sshll.u32 %s3119_s24, 3  ;;  %s1637_s27 = sshll.u32 %s3119_s24, 2  ;;  %v2216_v61 = vld [vmem:[%s2983_s2] ss:$0 sm:$0xff] }
  0x13   : > { %s2137_s21 = scalar_lea.vmem %s2981_s0, %s1635_s14  ;;  %s2211_s30 = scalar_lea.vmem %s2984_s3, %s1637_s27 }
  0x14   : > { %434 = vmatpush1.bf16.msra.mxu0 %v1841_v4  ;;  %1822 = vmatpush1.bf16.msra.mxu1 %v1841_v4  ;;  %v262_v13 = vld [vmem:[%s2137_s21] sm:$0xff]  ;;  %v263_v14 = vld [vmem:[%s2137_s21 + $0x8] sm:$0xff]  ;;  %v264_v19 = vld [vmem:[%s2137_s21 + $0x10] sm:$0xff]  ;;  %s2474_s10 = scalar_lea.vmem %s2985_s4, %s1635_s14  ;;  %s3121_s19 = smov (!%p257_p4, %s2092_s19), 1 }
  0x15   : > { %435 = vmatprep.subr.bf16.mxu0 %v1842_v5  ;;  %1817 = vmatprep.subr.bf16.mxu1 %v1842_v5  ;;  %v278_v15 = vld [vmem:[%s2137_s21 + $0x80] sm:$0xff]  ;;  %v279_v16 = vld [vmem:[%s2137_s21 + $0x88] sm:$0xff]  ;;  %v294_v17 = vpack.c.bf16 %v263_v14, %v262_v13  ;;  %v265_v20 = vld [vmem:[%s2137_s21 + $0x18] sm:$0xff]  ;;  %s1640_s12 = sshll.u32 %s3121_s19, 3 }
  0x16   : > { %v302_v18 = vpack.c.bf16 %v279_v16, %v278_v15  ;;  %v280_v21 = vld [vmem:[%s2137_s21 + $0x90] sm:$0xff]  ;;  %v281_v22 = vld [vmem:[%s2137_s21 + $0x98] sm:$0xff]  ;;  %v295_v23 = vpack.c.bf16 %v265_v20, %v264_v19  ;;  %v266_v25 = vld [vmem:[%s2137_s21 + $0x20] sm:$0xff]  ;;  %v2251_v20 = vand.u32 127, %v1463_v3  ;;  %s260_s15 = scalar_lea.vmem %s2986_s5, %s1640_s12 }
  0x17   : > { %v303_v24 = vpack.c.bf16 %v281_v22, %v280_v21  ;;  %v267_v26 = vld [vmem:[%s2137_s21 + $0x28] sm:$0xff]  ;;  %v282_v27 = vld [vmem:[%s2137_s21 + $0xa0] sm:$0xff]  ;;  %v268_v31 = vld [vmem:[%s2137_s21 + $0x30] sm:$0xff] }
  0x18   : > { %436 = vmatpush1.bf16.msra.mxu0 %v1844_v6  ;;  %1823 = vmatpush1.bf16.msra.mxu1 %v1844_v6  ;;  %v283_v28 = vld [vmem:[%s2137_s21 + $0xa8] sm:$0xff]  ;;  %v296_v29 = vpack.c.bf16 %v267_v26, %v266_v25  ;;  %v269_v32 = vld [vmem:[%s2137_s21 + $0x38] sm:$0xff]  ;;  %v284_v33 = vld [vmem:[%s2137_s21 + $0xb0] sm:$0xff]  ;;  %vm1465_vm1 = vcmp.lt.s32.totalorder %v2251_v20, 48 }
  0x19   : > { %437 = vmatprep.subr.bf16.mxu0 %v1845_v7  ;;  %1818 = vmatprep.subr.bf16.mxu1 %v1845_v7  ;;  %v304_v30 = vpack.c.bf16 %v283_v28, %v282_v27  ;;  %v285_v34 = vld [vmem:[%s2137_s21 + $0xb8] sm:$0xff]  ;;  %v297_v35 = vpack.c.bf16 %v269_v32, %v268_v31  ;;  %v270_v37 = vld [vmem:[%s2137_s21 + $0x40] sm:$0xff]  ;;  %v271_v38 = vld [vmem:[%s2137_s21 + $0x48] sm:$0xff] }
  0x1a   : > { %v305_v36 = vpack.c.bf16 %v285_v34, %v284_v33  ;;  %v286_v39 = vld [vmem:[%s2137_s21 + $0xc0] sm:$0xff]  ;;  %v287_v40 = vld [vmem:[%s2137_s21 + $0xc8] sm:$0xff]  ;;  %v298_v41 = vpack.c.bf16 %v271_v38, %v270_v37  ;;  %v272_v43 = vld [vmem:[%s2137_s21 + $0x50] sm:$0xff] }
  0x1b   : > { %v306_v42 = vpack.c.bf16 %v287_v40, %v286_v39  ;;  %v273_v44 = vld [vmem:[%s2137_s21 + $0x58] sm:$0xff]  ;;  %v288_v45 = vld [vmem:[%s2137_s21 + $0xd0] sm:$0xff]  ;;  %v274_v49 = vld [vmem:[%s2137_s21 + $0x60] sm:$0xff] }
  0x1c   : > { %438 = vmatpush1.bf16.msra.mxu0 %v1847_v8  ;;  %1824 = vmatpush1.bf16.msra.mxu1 %v1847_v8  ;;  %v289_v46 = vld [vmem:[%s2137_s21 + $0xd8] sm:$0xff]  ;;  %v299_v47 = vpack.c.bf16 %v273_v44, %v272_v43  ;;  %v275_v50 = vld [vmem:[%s2137_s21 + $0x68] sm:$0xff]  ;;  %v290_v51 = vld [vmem:[%s2137_s21 + $0xe0] sm:$0xff] }
  0x1d   : > { %439 = vmatprep.subr.bf16.mxu0 %v1848_v9  ;;  %1819 = vmatprep.subr.bf16.mxu1 %v1848_v9  ;;  %v307_v48 = vpack.c.bf16 %v289_v46, %v288_v45  ;;  %v291_v52 = vld [vmem:[%s2137_s21 + $0xe8] sm:$0xff]  ;;  %v300_v53 = vpack.c.bf16 %v275_v50, %v274_v49  ;;  %v276_v55 = vld [vmem:[%s2137_s21 + $0x70] sm:$0xff]  ;;  %v277_v56 = vld [vmem:[%s2137_s21 + $0x78] sm:$0xff] }
  0x1e   : > { %v308_v54 = vpack.c.bf16 %v291_v52, %v290_v51  ;;  %v292_v57 = vld [vmem:[%s2137_s21 + $0xf0] sm:$0xff]  ;;  %v293_v58 = vld [vmem:[%s2137_s21 + $0xf8] sm:$0xff]  ;;  %v301_v59 = vpack.c.bf16 %v277_v56, %v276_v55  ;;  %v2223_v0 = vld [vmem:[%s2211_s30] sm:$0xff]  }
  0x1f   : > { %v309_v60 = vpack.c.bf16 %v293_v58, %v292_v57  ;;  %v2226_v1 = vld [vmem:[%s2211_s30 + $0x40] sm:$0xff]   ;;  %v2235_v9 = vld [vmem:[%s2211_s30 + $0x8] sm:$0xff]   ;;  %v2249_v19 = vld [vmem:[%s2211_s30 + $0x10] sm:$0xff]  }
  0x20   : > { %440 = vmatpush1.bf16.msra.mxu0 %v1850_v10  ;;  %1825 = vmatpush1.bf16.msra.mxu1 %v1850_v10  ;;  %v2240_v14 = vld [vmem:[%s2211_s30 + $0x48] sm:$0xff]   ;;  %v2273_v34 = vld [vmem:[%s2211_s30 + $0x58] sm:$0xff]   ;;  %v2286_v45 = vld [vmem:[%s2211_s30 + $0x20] sm:$0xff]  }
  0x21   : > { %441 = vmatprep.subr.bf16.mxu0 %v1851_v11  ;;  %1820 = vmatprep.subr.bf16.mxu1 %v1851_v11  ;;  %3016 = vst [vmem:[#allocation3_spill] sm:$0xff] %v2273_v34  ;;  %3017 = vst [vmem:[#allocation4_spill] sm:$0xff] %v2286_v45  ;;  %v2289_v46 = vld [vmem:[%s2211_s30 + $0x60] sm:$0xff]  }
  0x24   : > { %442 = vmatpush1.bf16.msra.mxu0 %v1853_v12  ;;  %1826 = vmatpush1.bf16.msra.mxu1 %v1853_v12 }
  0x27   : > { %1653 = vmatmul.mubr.msk.bf16.vlgmr.msra.gmra.mrb[0].mxu0 %vm382_vm0, %v294_v17  ;;  %1661 = vmatmul.mubr.msk.bf16.vlgmr.msra.gmra.mrb[0].mxu1 %vm382_vm0, %v302_v18 }
  0x28   : > { %473 = vmatprep.mubr.bf16.mxu0 %v2055_v2  ;;  %553 = vmatprep.mubr.bf16.mxu1 %v2055_v2 }
  0x2f   : > { %1654 = vmatmul.mubr.msk.bf16.gmra.mrb[4].mxu0 %vm382_vm0, %v295_v23  ;;  %1662 = vmatmul.mubr.msk.bf16.gmra.mrb[4].mxu1 %vm382_vm0, %v303_v24  ;;  %v2257_v24 = vld [vmem:[%s2211_s30 + $0x50] sm:$0xff]  }
  0x30   : > { %483 = vmatprep.mubr.bf16.mxu0 %v2055_v2  ;;  %563 = vmatprep.mubr.bf16.mxu1 %v2055_v2 }
  0x37   : > { %1655 = vmatmul.mubr.msk.bf16.gmra.mrb[8].mxu0 %vm382_vm0, %v296_v29  ;;  %1663 = vmatmul.mubr.msk.bf16.gmra.mrb[8].mxu1 %vm382_vm0, %v304_v30  ;;  %v2264_v29 = vld [vmem:[%s2211_s30 + $0x18] sm:$0xff]  }
  0x38   : > { %493 = vmatprep.mubr.bf16.mxu0 %v2055_v2  ;;  %573 = vmatprep.mubr.bf16.mxu1 %v2055_v2  ;;  %3015 = vst [vmem:[#allocation2_spill] sm:$0xff] %v2264_v29 }
  0x3f   : > { %1656 = vmatmul.mubr.msk.bf16.gmra.mrb[12].mxu0 %vm382_vm0, %v297_v35  ;;  %1664 = vmatmul.mubr.msk.bf16.gmra.mrb[12].mxu1 %vm382_vm0, %v305_v36 }
  0x40   : > { %503 = vmatprep.mubr.bf16.mxu0 %v2055_v2  ;;  %583 = vmatprep.mubr.bf16.mxu1 %v2055_v2 }
  0x47   : > { %1657 = vmatmul.mubr.msk.bf16.gmra.mrb[16].mxu0 %vm382_vm0, %v298_v41  ;;  %1665 = vmatmul.mubr.msk.bf16.gmra.mrb[16].mxu1 %vm382_vm0, %v306_v42 }
  0x48   : > { %513 = vmatprep.mubr.bf16.mxu0 %v2055_v2  ;;  %593 = vmatprep.mubr.bf16.mxu1 %v2055_v2 }
  0x4f   : > { %1658 = vmatmul.mubr.msk.bf16.gmra.mrb[20].mxu0 %vm382_vm0, %v299_v47  ;;  %1666 = vmatmul.mubr.msk.bf16.gmra.mrb[20].mxu1 %vm382_vm0, %v307_v48 }
  0x50   : > { %523 = vmatprep.mubr.bf16.mxu0 %v2055_v2  ;;  %603 = vmatprep.mubr.bf16.mxu1 %v2055_v2 }
  0x57   : > { %1659 = vmatmul.mubr.msk.bf16.gmra.mrb[24].mxu0 %vm382_vm0, %v300_v53  ;;  %1667 = vmatmul.mubr.msk.bf16.gmra.mrb[24].mxu1 %vm382_vm0, %v308_v54 }
  0x58   : > { %533 = vmatprep.mubr.bf16.mxu0 %v2055_v2  ;;  %613 = vmatprep.mubr.bf16.mxu1 %v2055_v2 }
  0x5f   : > { %1660 = vmatmul.mubr.msk.bf16.gmra.mrb[28].mxu0 %vm382_vm0, %v301_v59  ;;  %1668 = vmatmul.mubr.msk.bf16.gmra.mrb[28].mxu1 %vm382_vm0, %v309_v60 }
  0xfa   : > { %v2218_v62 = vpop.f32.mrb[0].mxu0  ;;  %v2220_v63 = vpop.f32.mrb[0].mxu1 }
  0xfb   : > { %v467_v2 = vpop.f32.mrb[1].mxu0  ;;  %v547_v4 = vpop.f32.mrb[1].mxu1 }
  0xfc   : > { %v631_v5 = vadd.f32 %v2216_v61, %v467_v2  ;;  %v647_v6 = vadd.f32 %v2216_v61, %v547_v4  ;;  %v2230_v7 = vpop.f32.mrb[2].mxu0  ;;  %v2232_v8 = vpop.f32.mrb[2].mxu1 }
  0xfd   : > { %v471_v12 = vpop.f32.mrb[3].mxu0  ;;  %v551_v13 = vpop.f32.mrb[3].mxu1 }
  0xfe   : > { %v2242_v15 = vadd.f32 -5.0, %v631_v5  ;;  %v2244_v16 = vadd.f32 -5.0, %v647_v6  ;;  %v632_v17 = vadd.f32 %v2216_v61, %v471_v12  ;;  %v648_v18 = vadd.f32 %v2216_v61, %v551_v13 }
  0xff   : > { %v2306_v13 = vmul.f32 %v2218_v62, %v2218_v62 }
 0x100   : > { %v727_v25 = vand.u32 2147483647, %v2242_v15  ;;  %v743_v26 = vand.u32 2147483647, %v2244_v16  ;;  %v2266_v30 = vadd.f32 -5.0, %v632_v17  ;;  %v2268_v31 = vadd.f32 -5.0, %v648_v18 }
 0x102   : > { %v759_v35 = vsub.f32 0.0, %v727_v25  ;;  %v775_v36 = vsub.f32 0.0, %v743_v26  ;;  %v2275_v37 = vpop.f32.mrb[4].mxu0  ;;  %v2277_v38 = vpop.f32.mrb[4].mxu1  ;;  %v728_v41 = vand.u32 2147483647, %v2266_v30  ;;  %v2314_v26 = vmul.f32 %v2220_v63, %v2220_v63 }
 0x103   : > { %v744_v42 = vand.u32 2147483647, %v2268_v31  ;;  %v477_v49 = vpop.f32.mrb[5].mxu0  ;;  %v557_v50 = vpop.f32.mrb[5].mxu1 }
 0x104   : > { %v791_v47 = vmul.f32 1.442695, %v759_v35  ;;  %v823_v48 = vmul.f32 1.442695, %v775_v36  ;;  %v760_v53 = vsub.f32 0.0, %v728_v41  ;;  %v633_v55 = vadd.f32 %v2216_v61, %v477_v49  ;;  %v2295_v57 = vpop.f32.mrb[6].mxu0 }
 0x105   : > { %v776_v54 = vsub.f32 0.0, %v744_v42  ;;  %v649_v56 = vadd.f32 %v2216_v61, %v557_v50  ;;  %v2297_v58 = vpop.f32.mrb[6].mxu1  ;;  %v481_v59 = vpop.f32.mrb[7].mxu0  ;;  %v2318_v35 = vmul.f32 %v2230_v7, %v2230_v7  ;;  %v2323_v41 = vmul.f32 %v2232_v8, %v2232_v8 }
 0x106   : > { %1854 = vpow2.f32 %v791_v47  ;;  %v561_v60 = vpop.f32.mrb[7].mxu1  ;;  %v793_v5 = vmul.f32 1.442695, %v760_v53  ;;  %v2302_v12 = vadd.f32 -5.0, %v633_v55  ;;  %v634_v18 = vadd.f32 %v2216_v61, %v481_v59 }
 0x107   : > { %1856 = vpow2.f32 %v823_v48  ;;  %v825_v6 = vmul.f32 1.442695, %v776_v54  ;;  %v2308_v17 = vadd.f32 -5.0, %v649_v56  ;;  %v650_v25 = vadd.f32 %v2216_v61, %v561_v60 }
 0x108   : > { %1858 = vpow2.f32 %v793_v5  ;;  %v729_v36 = vand.u32 2147483647, %v2302_v12  ;;  %v2326_v47 = vadd.f32 -5.0, %v634_v18  ;;  %v2362_v28 = vmul.f32 %v2295_v57, %v2295_v57 }
 0x109   : > { %1860 = vpow2.f32 %v825_v6  ;;  %v745_v42 = vand.u32 2147483647, %v2308_v17  ;;  %v2333_v54 = vadd.f32 -5.0, %v650_v25 }
 0x10a   : > { %v2328_v48 = vpop.f32.mrb[8].mxu0  ;;  %v2330_v49 = vpop.f32.mrb[8].mxu1  ;;  %v761_v53 = vsub.f32 0.0, %v729_v36  ;;  %v730_v6 = vand.u32 2147483647, %v2326_v47 }
 0x10b   : > { %v487_v55 = vpop.f32.mrb[9].mxu0  ;;  %v567_v56 = vpop.f32.mrb[9].mxu1  ;;  %v777_v5 = vsub.f32 0.0, %v745_v42  ;;  %v746_v25 = vand.u32 2147483647, %v2333_v54 }
 0x10c   : > { %v635_v18 = vadd.f32 %v2216_v61, %v487_v55  ;;  %v2339_v4 = vpop.f32.mrb[10].mxu0  ;;  %v2341_v3 = vpop.f32.mrb[10].mxu1  ;;  %v795_v36 = vmul.f32 1.442695, %v761_v53  ;;  %v651_v52 = vadd.f32 %v2216_v61, %v567_v56  ;;  %v762_v42 = vsub.f32 0.0, %v730_v6 }
 0x10d   : > { %3018 = vst [vmem:[#allocation5_spill] sm:$0xff] %v2341_v3  ;;  %v491_v51 = vpop.f32.mrb[11].mxu0  ;;  %v827_v44 = vmul.f32 1.442695, %v777_v5  ;;  %v571_v40 = vpop.f32.mrb[11].mxu1  ;;  %v2351_v55 = vmul.f32 %v2275_v37, %v2275_v37  ;;  %v778_v39 = vsub.f32 0.0, %v746_v25  ;;  %v2357_v56 = vmul.f32 %v2277_v38, %v2277_v38 }
 0x10e   : > { %v2347_v43 = vadd.f32 -5.0, %v635_v18  ;;  %1862 = vpow2.f32 %v795_v36  ;;  %v2353_v33 = vadd.f32 -5.0, %v651_v52  ;;  %v797_v32 = vmul.f32 1.442695, %v762_v42 }
 0x10f   : > { %1864 = vpow2.f32 %v827_v44  ;;  %v829_v27 = vmul.f32 1.442695, %v778_v39  ;;  %v636_v23 = vadd.f32 %v2216_v61, %v491_v51  ;;  %v652_v39 = vadd.f32 %v2216_v61, %v571_v40 }
 0x110   : > { %v1855_v53 = vpop.eup %1854  ;;  %v731_v5 = vand.u32 2147483647, %v2347_v43  ;;  %v747_v36 = vand.u32 2147483647, %v2353_v33  ;;  %1866 = vpow2.f32 %v797_v32 }
 0x111   : > { %v1857_v6 = vpop.eup %1856  ;;  %v855_v18 = vadd.f32 1.0, %v1855_v53  ;;  %v2372_v53 = vmul.f32 %v2297_v58, %v2297_v58  ;;  %v2375_v51 = vadd.f32 -5.0, %v636_v23  ;;  %v2382_v50 = vadd.f32 -5.0, %v652_v39 }
 0x112   : > { %v871_v52 = vadd.f32 1.0, %v1857_v6  ;;  %v763_v25 = vsub.f32 0.0, %v731_v5  ;;  %v2366_v22 = vpop.f32.mrb[12].mxu0  ;;  %v2368_v44 = vpop.f32.mrb[12].mxu1  ;;  %v779_v21 = vsub.f32 0.0, %v747_v36  ;;  %v2389_v23 = vmul.f32 %v2328_v48, %v2328_v48 }
 0x113   : > { %3019 = vst [vmem:[#allocation6_spill] sm:$0xff] %v2366_v22  ;;  %3020 = vst [vmem:[#allocation7_spill] sm:$0xff] %v2368_v44  ;;  %v1859_v42 = vpop.eup %1858  ;;  %1868 = vlog2.f32 %v855_v18  ;;  %v497_v11 = vpop.f32.mrb[13].mxu0  ;;  %v2396_v39 = vmul.f32 %v2330_v49, %v2330_v49 }
 0x114   : > { %v577_v10 = vpop.f32.mrb[13].mxu1  ;;  %v1861_v6 = vpop.eup %1860  ;;  %1870 = vlog2.f32 %v871_v52  ;;  %v856_v32 = vadd.f32 1.0, %v1859_v42  ;;  %v799_v5 = vmul.f32 1.442695, %v763_v25  ;;  %3023 = vst [vmem:[#allocation10_spill] sm:$0xff] %v2382_v50 }
 0x115   : > { %v2377_v59 = vpop.f32.mrb[14].mxu0  ;;  %v2379_v2 = vpop.f32.mrb[14].mxu1  ;;  %v872_v18 = vadd.f32 1.0, %v1861_v6  ;;  %1872 = vpow2.f32 %v829_v27  ;;  %v732_v25 = vand.u32 2147483647, %v2375_v51  ;;  %v637_v27 = vadd.f32 %v2216_v61, %v497_v11 }
 0x116   : > { %3021 = vst [vmem:[#allocation8_spill] sm:$0xff] %v2377_v59  ;;  %3022 = vst [vmem:[#allocation9_spill] sm:$0xff] %v2379_v2  ;;  %v501_v36 = vpop.f32.mrb[15].mxu0  ;;  %v2384_v40 = vpop.f32.mrb[15].mxu1  ;;  %1874 = vlog2.f32 %v856_v32  ;;  %v831_v42 = vmul.f32 1.442695, %v779_v21  ;;  %v653_v52 = vadd.f32 %v2216_v61, %v577_v10 }
 0x117   : > { %1876 = vlog2.f32 %v872_v18  ;;  %v748_v6 = vand.u32 2147483647, %v2382_v50  ;;  %v764_v32 = vsub.f32 0.0, %v732_v25  ;;  %v2401_v18 = vadd.f32 -5.0, %v637_v27 }
 0x118   : > { %1878 = vpow2.f32 %v799_v5  ;;  %v1863_v60 = vpop.eup %1862  ;;  %v2403_v11 = vadd.f32 -5.0, %v653_v52  ;;  %v638_v44 = vadd.f32 %v2216_v61, %v501_v36 }
 0x119   : > { %v780_v2 = vsub.f32 0.0, %v748_v6  ;;  %3024 = vst [vmem:[#allocation11_spill] sm:$0xff] %v2401_v18  ;;  %v1865_v21 = vpop.eup %1864  ;;  %v857_v29 = vadd.f32 1.0, %v1863_v60  ;;  %v801_v59 = vmul.f32 1.442695, %v764_v32  ;;  %1880 = vpow2.f32 %v831_v42 }
 0x11a   : > { %3025 = vst [vmem:[#allocation12_spill] sm:$0xff] %v2403_v11  ;;  %v2406_v22 = vpop.f32.mrb[16].mxu0  ;;  %v2408_v5 = vpop.f32.mrb[16].mxu1  ;;  %v873_v10 = vadd.f32 1.0, %v1865_v21  ;;  %v733_v45 = vand.u32 2147483647, %v2401_v18  ;;  %v2413_v6 = vmul.f32 %v2339_v4, %v2339_v4 }
 0x11b   : > { %3026 = vst [vmem:[#allocation13_spill] sm:$0xff] %v2406_v22  ;;  %3027 = vst [vmem:[#allocation14_spill] sm:$0xff] %v2408_v5  ;;  %v833_v25 = vmul.f32 1.442695, %v780_v2  ;;  %v1867_v34 = vpop.eup %1866  ;;  %1882 = vlog2.f32 %v857_v29  ;;  %v749_v60 = vand.u32 2147483647, %v2403_v11 }
 0x11c   : > { %v2416_v52 = vadd.f32 -5.0, %v638_v44  ;;  %v2418_v36 = vpop.f32.mrb[17].mxu0  ;;  %v2420_v27 = vpop.f32.mrb[17].mxu1  ;;  %1884 = vlog2.f32 %v873_v10  ;;  %v858_v42 = vadd.f32 1.0, %v1867_v34  ;;  %v765_v21 = vsub.f32 0.0, %v733_v45 }
 0x11d   : > { %3028 = vst [vmem:[#allocation15_spill] sm:$0xff] %v2418_v36  ;;  %3029 = vst [vmem:[#allocation16_spill] sm:$0xff] %v2420_v27  ;;  %v1869_v32 = vpop.eup %1868  ;;  %v2423_v5 = vpop.f32.mrb[18].mxu0  ;;  %1886 = vpow2.f32 %v801_v59  ;;  %v781_v44 = vsub.f32 0.0, %v749_v60  ;;  %v3035_v60 = vmax.f32 %v2244_v16, 0.0 }
 0x11e   : > { %3030 = vst [vmem:[#allocation17_spill] sm:$0xff] %v2423_v5  ;;  %v2425_v29 = vpop.f32.mrb[18].mxu1  ;;  %v1871_v22 = vpop.eup %1870  ;;  %v888_v18 = vmul.f32 0.6931472, %v1869_v32  ;;  %1888 = vlog2.f32 %v858_v42  ;;  %v803_v34 = vmul.f32 1.442695, %v765_v21 }
 0x11f   : > { %3031 = vst [vmem:[#allocation18_spill] sm:$0xff] %v2425_v29  ;;  %v2428_v50 = vpop.f32.mrb[19].mxu0  ;;  %v2430_v36 = vpop.f32.mrb[19].mxu1  ;;  %v920_v10 = vmul.f32 0.6931472, %v1871_v22  ;;  %v3034_v5 = vmax.f32 %v2242_v15, 0.0  ;;  %1890 = vpow2.f32 %v833_v25  ;;  %v2442_v15 = vadd.f32 %v2216_v61, %v2384_v40 }
 0x120   : > { %3032 = vst [vmem:[#allocation19_spill] sm:$0xff] %v2428_v50  ;;  %3033 = vst [vmem:[#allocation20_spill] sm:$0xff] %v2430_v36  ;;  %v1873_v27 = vpop.eup %1872  ;;  %v734_v45 = vand.u32 2147483647, %v2416_v52  ;;  %1892 = vpow2.f32 %v803_v34  ;;  %v2438_v36 = vmul.f32 1.442695, %v781_v44 }
 0x121   : > { %v1875_v2 = vpop.eup %1874  ;;  %v951_v29 = vadd.f32 %v888_v18, %v3034_v5  ;;  %v874_v3 = vadd.f32 1.0, %v1873_v27  ;;  %v967_v11 = vadd.f32 %v920_v10, %v3035_v60  ;;  %v3037_v25 = vmax.f32 %v2266_v30, 0.0 }
 0x122   : > { %v1877_v59 = vpop.eup %1876  ;;  %v890_v50 = vmul.f32 0.6931472, %v1875_v2  ;;  %v2444_v18 = vpop.f32.mrb[20].mxu0  ;;  %v2448_v10 = vsub.f32 0.0, %v734_v45 }
 0x123   : > { %v1879_v22 = vpop.eup %1878  ;;  %v983_v42 = vadd.f32 1e-06, %v951_v29  ;;  %v922_v21 = vmul.f32 0.6931472, %v1877_v59  ;;  %1894 = vlog2.f32 %v874_v3  ;;  %3036 = vst [vmem:[#allocation21_spill] sm:$0xff] %v2444_v18  ;;  %v2450_v2 = vpop.f32.mrb[20].mxu1 }
 0x124   : > { %v999_v5 = vadd.f32 1e-06, %v967_v11  ;;  %v952_v27 = vadd.f32 %v890_v50, %v3037_v25  ;;  %v859_v16 = vadd.f32 1.0, %v1879_v22  ;;  %3038 = vst [vmem:[#allocation22_spill] sm:$0xff] %v2450_v2  ;;  %v2452_v44 = vpop.f32.mrb[21].mxu0  ;;  %v3040_v3 = vmax.f32 %v2268_v31, 0.0  ;;  %v1881_v30 = vpop.eup %1880 }
 0x125   : > { %3039 = vst [vmem:[#allocation23_spill] sm:$0xff] %v2452_v44  ;;  %v1015_v29 = vmul.f32 0.5, %v983_v42  ;;  %v1207_v34 = vmul.f32 %v983_v42, %v983_v42  ;;  %1896 = vlog2.f32 %v983_v42  ;;  %v2456_v59 = vpop.f32.mrb[21].mxu1  ;;  %v2458_v11 = vpop.f32.mrb[22].mxu0  ;;  %v3045_v42 = vunpack.c.l.bf16 %v2223_v0 }
 0x126   : > { %v968_v40 = vadd.f32 %v922_v21, %v3040_v3  ;;  %3041 = vst [vmem:[#allocation24_spill] sm:$0xff] %v2456_v59  ;;  %3042 = vst [vmem:[#allocation25_spill] sm:$0xff] %v2458_v11  ;;  %v1031_v50 = vmul.f32 0.5, %v999_v5  ;;  %v1223_v60 = vmul.f32 %v999_v5, %v999_v5  ;;  %1898 = vlog2.f32 %v999_v5  ;;  %v2460_v22 = vpop.f32.mrb[22].mxu1  ;;  %v2462_v25 = vpop.f32.mrb[23].mxu0 }
 0x127   : > { %v984_v45 = vadd.f32 1e-06, %v952_v27  ;;  %3043 = vst [vmem:[#allocation26_spill] sm:$0xff] %v2460_v22  ;;  %3044 = vst [vmem:[#allocation27_spill] sm:$0xff] %v2462_v25  ;;  %v1883_v32 = vpop.eup %1882  ;;  %v1111_v2 = vmul.f32 %v3045_v42, %v1015_v29  ;;  %v1271_v31 = vadd.f32 %v2306_v13, %v1207_v34  ;;  %1900 = vlog2.f32 %v859_v16  ;;  %v2467_v3 = vpop.f32.mrb[23].mxu1 }
 0x128   : > { %v1000_v21 = vadd.f32 1e-06, %v968_v40  ;;  %3046 = vst [vmem:[#allocation28_spill] sm:$0xff] %v2467_v3  ;;  %v1885_v11 = vpop.eup %1884  ;;  %v3047_v5 = vunpack.c.l.bf16 %v2226_v1  ;;  %v1287_v22 = vadd.f32 %v2314_v26, %v1223_v60 }
 0x129   : > { %v1016_v29 = vmul.f32 0.5, %v984_v45  ;;  %v1208_v42 = vmul.f32 %v984_v45, %v984_v45  ;;  %v1887_v13 = vpop.eup %1886  ;;  %v1143_v16 = vadd.f32 %v1111_v2, %v2218_v62  ;;  %v1702_v34 = vadd.f32 -1.0, %v1271_v31 }
 0x12a   : > { %v1127_v27 = vmul.f32 %v3047_v5, %v1031_v50  ;;  %1902 = vlog2.f32 %v984_v45  ;;  %v1032_v40 = vmul.f32 0.5, %v1000_v21  ;;  %v1889_v18 = vpop.eup %1888  ;;  %v1718_v25 = vadd.f32 -1.0, %v1287_v22  ;;  %v2490_v45 = vpop.f32.mrb[24].mxu0 }
 0x12b   : > { %v3048_v50 = vunpack.c.h.bf16 %v2223_v0  ;;  %v1272_v26 = vadd.f32 %v2318_v35, %v1208_v42  ;;  %v2485_v60 = vpop.eup %1890  ;;  %1175 = vst [vmem:[%s2474_s10] sm:$0xff] %v1143_v16  ;;  %v1335_v59 = vmul.f32 0.5, %v1702_v34  ;;  %v3049_v62 = vunpack.c.h.bf16 %v2226_v1  ;;  %3050 = vst [vmem:[#allocation29_spill] sm:$0xff] %v2490_v45  ;;  %v2492_v44 = vpop.f32.mrb[24].mxu1 }
 0x12c   : > { %v1159_v3 = vadd.f32 %v1127_v27, %v2220_v63  ;;  %v1224_v31 = vmul.f32 %v1000_v21, %v1000_v21  ;;  %1904 = vlog2.f32 %v1000_v21  ;;  %3051 = vst [vmem:[#allocation30_spill] sm:$0xff] %v2492_v44  ;;  %v2494_v63 = vpop.eup %1892  ;;  %v1351_v0 = vmul.f32 0.5, %v1718_v25  ;;  %v2500_v42 = vpop.f32.mrb[25].mxu1 }
 0x12d   : > { %v1112_v5 = vmul.f32 %v3048_v50, %v1016_v29  ;;  %v1128_v2 = vmul.f32 %v3049_v62, %v1032_v40  ;;  %v1703_v22 = vadd.f32 -1.0, %v1272_v26  ;;  %v892_v27 = vmul.f32 0.6931472, %v1883_v32  ;;  %v2498_v29 = vpop.f32.mrb[25].mxu0  ;;  %v1895_v1 = vpop.eup %1894 }
 0x12e   : > { %1191 = vst [vmem:[%s2474_s10 + $0x80] sm:$0xff] %v1159_v3  ;;  %v1288_v16 = vadd.f32 %v2323_v41, %v1224_v31  ;;  %v924_v34 = vmul.f32 0.6931472, %v1885_v11  ;;  %v894_v40 = vmul.f32 0.6931472, %v1889_v18  ;;  %v2504_v50 = vpop.f32.mrb[26].mxu0 }
 0x12f   : > { %v1144_v35 = vadd.f32 %v1112_v5, %v2230_v7  ;;  %v1160_v21 = vadd.f32 %v1128_v2, %v2232_v8  ;;  %3052 = vst [vmem:[#allocation31_spill] sm:$0xff] %v2504_v50  ;;  %v2506_v3 = vpop.f32.mrb[26].mxu1  ;;  %v1336_v7 = vmul.f32 0.5, %v1703_v22  ;;  %v3054_v32 = vmax.f32 %v2302_v12, 0.0  ;;  %v2511_v62 = vpop.f32.mrb[27].mxu0 }
 0x130   : > { %3053 = vst [vmem:[#allocation32_spill] sm:$0xff] %v2506_v3  ;;  %v926_v5 = vmul.f32 0.6931472, %v1895_v1  ;;  %v875_v26 = vadd.f32 1.0, %v1881_v30  ;;  %v2513_v44 = vpop.f32.mrb[27].mxu1  ;;  %v1897_v8 = vpop.eup %1896  ;;  %v1719_v41 = vadd.f32 -1.0, %v1288_v16 }
 0x131   : > { %1176 = vst [vmem:[%s2474_s10 + $0x8] sm:$0xff] %v1144_v35  ;;  %v953_v25 = vadd.f32 %v892_v27, %v3054_v32  ;;  %1192 = vst [vmem:[%s2474_s10 + $0x88] sm:$0xff] %v1160_v21  ;;  %v3055_v18 = vmax.f32 %v2308_v17, 0.0  ;;  %v3056_v2 = vmax.f32 %v2326_v47, 0.0  ;;  %v860_v35 = vadd.f32 1.0, %v1887_v13  ;;  %v1899_v22 = vpop.eup %1898 }
 0x132   : > { %v1368_v3 = vmul.f32 0.6931472, %v1897_v8  ;;  %v3057_v27 = vmax.f32 %v2333_v54, 0.0  ;;  %1906 = vlog2.f32 %v875_v26  ;;  %v1901_v1 = vpop.eup %1900  ;;  %v1400_v32 = vmul.f32 0.6931472, %v1899_v22  ;;  %v2522_v8 = vpop.f32.mrb[28].mxu0 }
 0x133   : > { %v969_v11 = vadd.f32 %v924_v34, %v3055_v18  ;;  %v954_v31 = vadd.f32 %v894_v40, %v3056_v2  ;;  %v985_v12 = vadd.f32 1e-06, %v953_v25  ;;  %v1352_v50 = vmul.f32 0.5, %v1719_v41  ;;  %v2524_v25 = vpop.f32.mrb[28].mxu1 }
 0x134   : > { %v970_v30 = vadd.f32 %v926_v5, %v3057_v27  ;;  %1908 = vlog2.f32 %v860_v35  ;;  %v1431_v21 = vsub.f32 %v1335_v59, %v1368_v3  ;;  %v1903_v34 = vpop.eup %1902  ;;  %v1447_v47 = vsub.f32 %v1351_v0, %v1400_v32  ;;  %v2531_v3 = vpop.f32.mrb[29].mxu0 }
 0x135   : > { %v1001_v45 = vadd.f32 1e-06, %v969_v11  ;;  %v1017_v16 = vmul.f32 0.5, %v985_v12  ;;  %v1209_v17 = vmul.f32 %v985_v12, %v985_v12  ;;  %1910 = vlog2.f32 %v985_v12  ;;  %v2533_v18 = vpop.f32.mrb[29].mxu1  ;;  %v2540_v12 = vpop.f32.mrb[30].mxu0 }
 0x136   : > { %v1466_v54 = vsel %vm1465_vm1, %v1431_v21, 0.0  ;;  %v1370_v5 = vmul.f32 0.6931472, %v1903_v34  ;;  %v3058_v26 = vunpack.c.l.bf16 %v2235_v9  ;;  %v1905_v0 = vpop.eup %1904  ;;  %v3059_v11 = vunpack.c.l.bf16 %v2240_v14  ;;  %3060 = vst [vmem:[#allocation33_spill] sm:$0xff] %v2540_v12  ;;  %v2542_v27 = vpop.f32.mrb[30].mxu1 }
 0x137   : > { %v1033_v40 = vmul.f32 0.5, %v1001_v45  ;;  %v1225_v13 = vmul.f32 %v1001_v45, %v1001_v45  ;;  %1912 = vlog2.f32 %v1001_v45  ;;  %v1273_v59 = vadd.f32 %v2351_v55, %v1209_v17  ;;  %3061 = vst [vmem:[#allocation34_spill] sm:$0xff] %v2542_v27  ;;  %v2547_v17 = vpop.f32.mrb[31].mxu0  ;;  %v2549_v34 = vpop.f32.mrb[31].mxu1 }
 0x138   : > { %v1113_v41 = vmul.f32 %v3058_v26, %v1017_v16  ;;  %v1482_v45 = vsel %vm1465_vm1, %v1447_v47, 0.0  ;;  %v986_v22 = vadd.f32 1e-06, %v954_v31  ;;  %v1432_v32 = vsub.f32 %v1336_v7, %v1370_v5 }
 0x139   : > { %v1129_v2 = vmul.f32 %v3059_v11, %v1033_v40  ;;  %v1289_v35 = vadd.f32 %v2357_v56, %v1225_v13  ;;  %v2544_v55 = vadd.f32 %v1482_v45, %v1466_v54  ;;  %v1402_v21 = vmul.f32 0.6931472, %v1905_v0 }
 0x13a   : > { %v1145_v16 = vadd.f32 %v1113_v41, %v2275_v37  ;;  %v1704_v47 = vadd.f32 -1.0, %v1273_v59  ;;  %v1018_v31 = vmul.f32 0.5, %v986_v22  ;;  %v1467_v13 = vsel %vm1465_vm1, %v1432_v32, 0.0 }
 0x13b   : > { %v1161_v56 = vadd.f32 %v1129_v2, %v2277_v38  ;;  %v1720_v40 = vadd.f32 -1.0, %v1289_v35  ;;  %v1448_v26 = vsub.f32 %v1352_v50, %v1402_v21  ;;  %v1210_v54 = vmul.f32 %v986_v22, %v986_v22 }
 0x13c   : > { %1177 = vst [vmem:[%s2474_s10 + $0x10] sm:$0xff] %v1145_v16  ;;  %1914 = vlog2.f32 %v986_v22  ;;  %v1337_v7 = vmul.f32 0.5, %v1704_v47  ;;  %v3062_v37 = vunpack.c.h.bf16 %v2235_v9  ;;  %v1002_v41 = vadd.f32 1e-06, %v970_v30  ;;  %v1907_v59 = vpop.eup %1906 }
 0x13d   : > { %1193 = vst [vmem:[%s2474_s10 + $0x90] sm:$0xff] %v1161_v56  ;;  %1916 = vpow2.f32 %v2438_v36  ;;  %v1483_v38 = vsel %vm1465_vm1, %v1448_v26, 0.0  ;;  %v1353_v0 = vmul.f32 0.5, %v1720_v40  ;;  %v1274_v45 = vadd.f32 %v2362_v28, %v1210_v54 }
 0x13e   : > { %v1114_v5 = vmul.f32 %v3062_v37, %v1018_v31  ;;  %v896_v50 = vmul.f32 0.6931472, %v1901_v1  ;;  %v1909_v11 = vpop.eup %1908  ;;  %v2562_v2 = vadd.f32 %v1483_v38, %v1467_v13  ;;  %v1034_v22 = vmul.f32 0.5, %v1002_v41 }
 0x13f   : > { %v1226_v9 = vmul.f32 %v1002_v41, %v1002_v41  ;;  %v1911_v32 = vpop.eup %1910  ;;  %v1705_v30 = vadd.f32 -1.0, %v1274_v45  ;;  %1918 = vlog2.f32 %v1002_v41  ;;  %v3063_v36 = vmax.f32 %v2347_v43, 0.0 }
 0x140   : > { %v1146_v35 = vadd.f32 %v1114_v5, %v2295_v57  ;;  %v928_v16 = vmul.f32 0.6931472, %v1907_v59  ;;  %v1372_v56 = vmul.f32 0.6931472, %v1911_v32  ;;  %v3064_v28 = vunpack.c.h.bf16 %v2240_v14 }
 0x141   : > { %v955_v21 = vadd.f32 %v896_v50, %v3063_v36  ;;  %v1913_v47 = vpop.eup %1912  ;;  %v1290_v40 = vadd.f32 %v2372_v53, %v1226_v9  ;;  %v898_v31 = vmul.f32 0.6931472, %v1909_v11  ;;  %v3065_v26 = vmax.f32 %v2353_v33, 0.0 }
 0x142   : > { %1178 = vst [vmem:[%s2474_s10 + $0x18] sm:$0xff] %v1146_v35  ;;  %v1130_v1 = vmul.f32 %v3064_v28, %v1034_v22  ;;  %v1404_v57 = vmul.f32 0.6931472, %v1913_v47  ;;  %v876_v37 = vadd.f32 1.0, %v2485_v60  ;;  %v1433_v43 = vsub.f32 %v1337_v7, %v1372_v56 }
 0x143   : > { %v987_v13 = vadd.f32 1e-06, %v955_v21  ;;  %v971_v54 = vadd.f32 %v928_v16, %v3065_v26  ;;  %v1338_v5 = vmul.f32 0.5, %v1705_v30  ;;  %v3066_v59 = vmax.f32 %v2375_v51, 0.0 }
 0x144   : > { %v1162_v41 = vadd.f32 %v1130_v1, %v2297_v58  ;;  %v1449_v14 = vsub.f32 %v1353_v0, %v1404_v57  ;;  %v1468_v53 = vsel %vm1465_vm1, %v1433_v43, 0.0  ;;  %v1721_v11 = vadd.f32 -1.0, %v1290_v40 }
 0x145   : > { %v956_v38 = vadd.f32 %v898_v31, %v3066_v59  ;;  %v1019_v45 = vmul.f32 0.5, %v987_v13  ;;  %v1211_v50 = vmul.f32 %v987_v13, %v987_v13  ;;  %1920 = vlog2.f32 %v987_v13 }
 0x146   : > { %1194 = vst [vmem:[%s2474_s10 + $0x98] sm:$0xff] %v1162_v41  ;;  %v1003_v33 = vadd.f32 1e-06, %v971_v54  ;;  %v1915_v22 = vpop.eup %1914  ;;  %v1484_v60 = vsel %vm1465_vm1, %v1449_v14, 0.0  ;;  %v3067_v58 = vunpack.c.l.bf16 %v2249_v19  ;;  %1922 = vlog2.f32 %v876_v37  ;;  %v2599_v54 = vld [vmem:[%s2211_s30 + $0x28] sm:$0xff]  }
 0x147   : > { %v988_v35 = vadd.f32 1e-06, %v956_v38  ;;  %v1275_v51 = vadd.f32 %v2389_v23, %v1211_v50  ;;  %v1917_v0 = vpop.eup %1916  ;;  %v2585_v9 = vadd.f32 %v1484_v60, %v1468_v53  ;;  %v1374_v32 = vmul.f32 0.6931472, %v1915_v22 }
 0x148   : > { %v1115_v7 = vmul.f32 %v3067_v58, %v1019_v45  ;;  %v1035_v30 = vmul.f32 0.5, %v1003_v33  ;;  %v1227_v36 = vmul.f32 %v1003_v33, %v1003_v33  ;;  %1924 = vlog2.f32 %v1003_v33  ;;  %v3071_v58 = vld [vmem:[#allocation15_spill] sm:$0xff] }
 0x149   : > { %v1020_v16 = vmul.f32 0.5, %v988_v35  ;;  %v2589_v47 = vadd.f32 -5.0, %v2442_v15  ;;  %v1434_v56 = vsub.f32 %v1338_v5, %v1374_v32  ;;  %v3068_v28 = vunpack.c.l.bf16 %v2257_v24  ;;  %v1919_v31 = vpop.eup %1918 }
 0x14a   : > { %v1147_v21 = vadd.f32 %v1115_v7, %v2328_v48  ;;  %v1291_v1 = vadd.f32 %v2396_v39, %v1227_v36  ;;  %v1212_v40 = vmul.f32 %v988_v35, %v988_v35  ;;  %v1706_v57 = vadd.f32 -1.0, %v1275_v51  ;;  %v3073_v36 = vld [vmem:[#allocation16_spill] sm:$0xff] }
 0x14b   : > { %v1131_v23 = vmul.f32 %v3068_v28, %v1035_v30  ;;  %v3069_v13 = vunpack.c.h.bf16 %v2249_v19  ;;  %1926 = vlog2.f32 %v988_v35  ;;  %v861_v48 = vadd.f32 1.0, %v2494_v63 }
 0x14c   : > { %1179 = vst [vmem:[%s2474_s10 + $0x20] sm:$0xff] %v1147_v21  ;;  %v1354_v15 = vmul.f32 0.5, %v1721_v11  ;;  %v1406_v37 = vmul.f32 0.6931472, %v1919_v31  ;;  %v1276_v41 = vadd.f32 %v2413_v6, %v1212_v40  ;;  %v877_v59 = vadd.f32 1.0, %v1917_v0  ;;  %v3072_v0 = vld [vmem:[#allocation10_spill] sm:$0xff] }
 0x14d   : > { %v1116_v26 = vmul.f32 %v3069_v13, %v1020_v16  ;;  %v1163_v43 = vadd.f32 %v1131_v23, %v2330_v49  ;;  %1928 = vlog2.f32 %v861_v48  ;;  %v1469_v19 = vsel %vm1465_vm1, %v1434_v56, 0.0  ;;  %v3070_v49 = vld [vmem:[#allocation5_spill] sm:$0xff]  ;;  %v3074_v56 = vld [vmem:[#allocation6_spill] sm:$0xff]  ;;  %v3075_v40 = vld [vmem:[#allocation19_spill] sm:$0xff] }
 0x14e   : > { %v1450_v38 = vsub.f32 %v1354_v15, %v1406_v37  ;;  %v805_v63 = vmul.f32 1.442695, %v2448_v10  ;;  %v1339_v50 = vmul.f32 0.5, %v1706_v57  ;;  %v1260_v53 = vmul.f32 %v3070_v49, %v3070_v49 }
 0x14f   : > { %v1148_v5 = vadd.f32 %v1116_v26, %v2339_v4  ;;  %1195 = vst [vmem:[%s2474_s10 + $0xa0] sm:$0xff] %v1163_v43  ;;  %v1921_v45 = vpop.eup %1920  ;;  %1930 = vlog2.f32 %v877_v59  ;;  %v750_v4 = vand.u32 2147483647, %v2589_v47  ;;  %v1722_v33 = vadd.f32 -1.0, %v1291_v1 }
 0x150   : > { %v1485_v6 = vsel %vm1465_vm1, %v1450_v38, 0.0  ;;  %v1376_v11 = vmul.f32 0.6931472, %v1921_v45  ;;  %1932 = vpow2.f32 %v805_v63  ;;  %v1923_v35 = vpop.eup %1922  ;;  %v1707_v10 = vadd.f32 -1.0, %v1276_v41  ;;  %v3076_v45 = vld [vmem:[#allocation11_spill] sm:$0xff] }
 0x151   : > { %1180 = vst [vmem:[%s2474_s10 + $0x28] sm:$0xff] %v1148_v5  ;;  %v2616_v22 = vadd.f32 %v1485_v6, %v1469_v19  ;;  %v782_v60 = vsub.f32 0.0, %v750_v4  ;;  %v639_v7 = vadd.f32 %v2216_v61, %v3071_v58  ;;  %v716_v32 = vmax.f32 %v3072_v0, 0.0 }
 0x152   : > { %v1435_v51 = vsub.f32 %v1339_v50, %v1376_v11  ;;  %v930_v30 = vmul.f32 0.6931472, %v1923_v35  ;;  %v655_v21 = vadd.f32 %v2216_v61, %v3073_v36  ;;  %v1925_v16 = vpop.eup %1924  ;;  %v2625_v28 = vmul.f32 %v3074_v56, %v3074_v56 }
 0x153   : > { %v837_v23 = vmul.f32 1.442695, %v782_v60  ;;  %v2627_v1 = vadd.f32 -5.0, %v639_v7  ;;  %v640_v31 = vadd.f32 %v2216_v61, %v3075_v40  ;;  %v1355_v57 = vmul.f32 0.5, %v1722_v33 }
 0x154   : > { %v1408_v13 = vmul.f32 0.6931472, %v1925_v16  ;;  %v972_v26 = vadd.f32 %v930_v30, %v716_v32  ;;  %v2631_v48 = vadd.f32 -5.0, %v655_v21  ;;  %v2633_v37 = vmul.f32 0.5, %v1707_v10  ;;  %v3078_v16 = vld [vmem:[#allocation12_spill] sm:$0xff] }
 0x155   : > { %v1927_v15 = vpop.eup %1926  ;;  %1934 = vpow2.f32 %v837_v23  ;;  %v735_v43 = vand.u32 2147483647, %v2627_v1  ;;  %v2636_v5 = vadd.f32 -5.0, %v640_v31  ;;  %v1470_v41 = vsel %vm1465_vm1, %v1435_v51, 0.0 }
 0x156   : > { %v1451_v59 = vsub.f32 %v1355_v57, %v1408_v13  ;;  %v2640_v19 = vmul.f32 0.6931472, %v1927_v15  ;;  %v1004_v38 = vadd.f32 1e-06, %v972_v26  ;;  %v701_v50 = vmax.f32 %v3076_v45, 0.0  ;;  %v3079_v15 = vld [vmem:[#allocation7_spill] sm:$0xff] }
 0x157   : > { %v1929_v63 = vpop.eup %1928  ;;  %v767_v4 = vsub.f32 0.0, %v735_v43  ;;  %v751_v6 = vand.u32 2147483647, %v2631_v48  ;;  %v736_v11 = vand.u32 2147483647, %v2636_v5  ;;  %v3077_v30 = vunpack.c.h.bf16 %v2257_v24  ;;  %v3081_v45 = vld [vmem:[#allocation8_spill] sm:$0xff] }
 0x158   : > { %v1486_v33 = vsel %vm1465_vm1, %v1451_v59, 0.0  ;;  %v1436_v35 = vsub.f32 %v2633_v37, %v2640_v19  ;;  %v1036_v10 = vmul.f32 0.5, %v1004_v38  ;;  %v1228_v60 = vmul.f32 %v1004_v38, %v1004_v38  ;;  %v3080_v19 = vld [vmem:[#allocation20_spill] sm:$0xff] }
 0x159   : > { %v1931_v58 = vpop.eup %1930  ;;  %v2649_v7 = vadd.f32 %v1486_v33, %v1470_v41  ;;  %1936 = vlog2.f32 %v1004_v38  ;;  %v900_v51 = vmul.f32 0.6931472, %v1929_v63  ;;  %v807_v0 = vmul.f32 1.442695, %v767_v4 }
 0x15a   : > { %v1933_v32 = vpop.eup %1932  ;;  %v1132_v36 = vmul.f32 %v3077_v30, %v1036_v10  ;;  %v1292_v21 = vadd.f32 %v1260_v53, %v1228_v60  ;;  %v717_v23 = vmax.f32 %v3078_v16, 0.0  ;;  %v932_v40 = vmul.f32 0.6931472, %v1931_v58  ;;  %v3084_v30 = vld [vmem:[#allocation9_spill] sm:$0xff] }
 0x15b   : > { %v957_v31 = vadd.f32 %v900_v51, %v701_v50  ;;  %v862_v57 = vadd.f32 1.0, %v1933_v32  ;;  %1938 = vpow2.f32 %v807_v0  ;;  %v783_v13 = vsub.f32 0.0, %v751_v6  ;;  %v3082_v51 = vld [vmem:[#allocation2_spill] sm:$0xff] }
 0x15c   : > { %v1164_v26 = vadd.f32 %v1132_v36, %v3070_v49  ;;  %v1261_v37 = vmul.f32 %v3079_v15, %v3079_v15  ;;  %v973_v43 = vadd.f32 %v932_v40, %v717_v23  ;;  %v768_v41 = vsub.f32 0.0, %v736_v11 }
 0x15d   : > { %v989_v59 = vadd.f32 1e-06, %v957_v31  ;;  %1940 = vlog2.f32 %v862_v57  ;;  %v839_v24 = vmul.f32 1.442695, %v783_v13  ;;  %v656_v53 = vadd.f32 %v2216_v61, %v3080_v19 }
 0x15e   : > { %1196 = vst [vmem:[%s2474_s10 + $0xa8] sm:$0xff] %v1164_v26  ;;  %v1723_v38 = vadd.f32 -1.0, %v1292_v21  ;;  %v1005_v63 = vadd.f32 1e-06, %v973_v43  ;;  %v2662_v50 = vmul.f32 %v3081_v45, %v3081_v45  ;;  %v809_v4 = vmul.f32 1.442695, %v768_v41 }
 0x15f   : > { %v1935_v49 = vpop.eup %1934  ;;  %v1021_v6 = vmul.f32 0.5, %v989_v59  ;;  %v1213_v33 = vmul.f32 %v989_v59, %v989_v59  ;;  %1942 = vlog2.f32 %v989_v59  ;;  %v2664_v10 = vadd.f32 -5.0, %v656_v53  ;;  %v3085_v21 = vld [vmem:[#allocation3_spill] sm:$0xff]  ;;  %v3087_v53 = vld [vmem:[#allocation13_spill] sm:$0xff] }
 0x160   : > { %v1037_v11 = vmul.f32 0.5, %v1005_v63  ;;  %v1229_v60 = vmul.f32 %v1005_v63, %v1005_v63  ;;  %1944 = vlog2.f32 %v1005_v63  ;;  %v878_v58 = vadd.f32 1.0, %v1935_v49 }
 0x161   : > { %v3083_v61 = vunpack.c.l.bf16 %v3082_v51  ;;  %v1277_v32 = vadd.f32 %v2625_v28, %v1213_v33  ;;  %v2671_v36 = vmul.f32 %v3084_v30, %v3084_v30  ;;  %1946 = vpow2.f32 %v839_v24 }
 0x162   : > { %v3086_v16 = vunpack.c.l.bf16 %v3085_v21  ;;  %v1293_v40 = vadd.f32 %v1261_v37, %v1229_v60  ;;  %1948 = vlog2.f32 %v878_v58  ;;  %v752_v31 = vand.u32 2147483647, %v2664_v10  ;;  %v3090_v60 = vld [vmem:[#allocation14_spill] sm:$0xff] }
 0x163   : > { %v1117_v0 = vmul.f32 %v3083_v61, %v1021_v6  ;;  %v1937_v57 = vpop.eup %1936  ;;  %v702_v26 = vmax.f32 %v2416_v52, 0.0  ;;  %v718_v28 = vmax.f32 %v2589_v47, 0.0  ;;  %1950 = vpow2.f32 %v809_v4  ;;  %v2690_v52 = vld [vmem:[%s2983_s2] ss:$0 sm:$0xff]  ;;  %v3088_v47 = vld [vmem:[#allocation23_spill] sm:$0xff] }
 0x164   : > { %v1133_v23 = vmul.f32 %v3086_v16, %v1037_v11  ;;  %v1356_v43 = vmul.f32 0.5, %v1723_v38  ;;  %v1410_v41 = vmul.f32 0.6931472, %v1937_v57  ;;  %v784_v24 = vsub.f32 0.0, %v752_v31  ;;  %v3089_v38 = vld [vmem:[#allocation24_spill] sm:$0xff]  ;;  %v3091_v31 = vld [vmem:[#allocation27_spill] sm:$0xff] }
 0x165   : > { %v1149_v13 = vadd.f32 %v1117_v0, %v3074_v56  ;;  %v1939_v19 = vpop.eup %1938  ;;  %v1471_v37 = vsel %vm1465_vm1, %v1436_v35, 0.0  ;;  %v2685_v63 = vmul.f32 %v3087_v53, %v3087_v53  ;;  %v641_v56 = vadd.f32 %v2690_v52, %v3088_v47 }
 0x166   : > { %v1165_v59 = vadd.f32 %v1133_v23, %v3079_v15  ;;  %v657_v15 = vadd.f32 %v2690_v52, %v3089_v38  ;;  %v1452_v4 = vsub.f32 %v1356_v43, %v1410_v41  ;;  %v1708_v49 = vadd.f32 -1.0, %v1277_v32 }
 0x167   : > { %1181 = vst [vmem:[%s2474_s10 + $0x30] sm:$0xff] %v1149_v13  ;;  %v863_v35 = vadd.f32 1.0, %v1939_v19  ;;  %v841_v6 = vmul.f32 1.442695, %v784_v24  ;;  %v1941_v33 = vpop.eup %1940  ;;  %v1724_v11 = vadd.f32 -1.0, %v1293_v40  ;;  %v2699_v58 = vmul.f32 %v3090_v60, %v3090_v60  ;;  %v3093_v40 = vld [vmem:[#allocation17_spill] sm:$0xff] }
 0x168   : > { %1197 = vst [vmem:[%s2474_s10 + $0xb0] sm:$0xff] %v1165_v59  ;;  %v2701_v61 = vadd.f32 -5.0, %v641_v56  ;;  %v2703_v0 = vadd.f32 -5.0, %v657_v15  ;;  %v1487_v16 = vsel %vm1465_vm1, %v1452_v4, 0.0  ;;  %v902_v23 = vmul.f32 0.6931472, %v1941_v33 }
 0x169   : > { %1952 = vlog2.f32 %v863_v35  ;;  %v642_v32 = vadd.f32 %v2690_v52, %v3091_v31  ;;  %v1943_v57 = vpop.eup %1942  ;;  %v2709_v13 = vadd.f32 %v1487_v16, %v1471_v37  ;;  %v2713_v43 = vmul.f32 %v3093_v40, %v3093_v40  ;;  %v3094_v35 = vld [vmem:[#allocation18_spill] sm:$0xff] }
 0x16a   : > { %1954 = vpow2.f32 %v841_v6  ;;  %v737_v41 = vand.u32 2147483647, %v2701_v61  ;;  %v1945_v59 = vpop.eup %1944  ;;  %v1341_v24 = vmul.f32 0.5, %v1708_v49  ;;  %v1380_v19 = vmul.f32 0.6931472, %v1943_v57 }
 0x16b   : > { %3092 = vst [vmem:[#allocation5_spill] sm:$0xff] %v2709_v13  ;;  %v958_v47 = vadd.f32 %v902_v23, %v702_v26  ;;  %v753_v56 = vand.u32 2147483647, %v2703_v0  ;;  %v1947_v38 = vpop.eup %1946  ;;  %v1357_v15 = vmul.f32 0.5, %v1724_v11  ;;  %v1412_v4 = vmul.f32 0.6931472, %v1945_v59 }
 0x16c   : > { %v2719_v37 = vmul.f32 %v3094_v35, %v3094_v35  ;;  %v769_v33 = vsub.f32 0.0, %v737_v41  ;;  %v1949_v16 = vpop.eup %1948  ;;  %v1437_v31 = vsub.f32 %v1341_v24, %v1380_v19  ;;  %v879_v6 = vadd.f32 1.0, %v1947_v38 }
 0x16d   : > { %v990_v14 = vadd.f32 1e-06, %v958_v47  ;;  %v2721_v39 = vadd.f32 -5.0, %v642_v32  ;;  %v1951_v27 = vpop.eup %1950  ;;  %v1453_v49 = vsub.f32 %v1357_v15, %v1412_v4  ;;  %v934_v57 = vmul.f32 0.6931472, %v1949_v16  ;;  %v3097_v16 = vld [vmem:[#allocation28_spill] sm:$0xff] }
 0x16e   : > { %v811_v26 = vmul.f32 1.442695, %v769_v33  ;;  %v785_v23 = vsub.f32 0.0, %v753_v56  ;;  %v1472_v11 = vsel %vm1465_vm1, %v1437_v31, 0.0  ;;  %v864_v24 = vadd.f32 1.0, %v1951_v27 }
 0x16f   : > { %v1022_v59 = vmul.f32 0.5, %v990_v14  ;;  %v1214_v12 = vmul.f32 %v990_v14, %v990_v14  ;;  %1956 = vlog2.f32 %v990_v14  ;;  %v1488_v41 = vsel %vm1465_vm1, %v1453_v49, 0.0 }
 0x170   : > { %v974_v13 = vadd.f32 %v934_v57, %v718_v28  ;;  %1958 = vlog2.f32 %v879_v6  ;;  %v2727_v19 = vadd.f32 %v1488_v41, %v1472_v11  ;;  %v3096_v32 = vunpack.c.h.bf16 %v3082_v51 }
 0x171   : > { %v1278_v38 = vadd.f32 %v2662_v50, %v1214_v12  ;;  %1960 = vpow2.f32 %v811_v26  ;;  %v843_v15 = vmul.f32 1.442695, %v785_v23  ;;  %v738_v14 = vand.u32 2147483647, %v2721_v39 }
 0x172   : > { %3095 = vst [vmem:[#allocation15_spill] sm:$0xff] %v2727_v19  ;;  %v1118_v47 = vmul.f32 %v3096_v32, %v1022_v59  ;;  %v1006_v56 = vadd.f32 1e-06, %v974_v13  ;;  %1962 = vlog2.f32 %v864_v24  ;;  %v703_v28 = vmax.f32 %v2627_v1, 0.0  ;;  %v3099_v59 = vld [vmem:[#allocation21_spill] sm:$0xff] }
 0x173   : > { %v1953_v4 = vpop.eup %1952  ;;  %v719_v27 = vmax.f32 %v2631_v48, 0.0  ;;  %v658_v51 = vadd.f32 %v2690_v52, %v3097_v16  ;;  %v1709_v13 = vadd.f32 -1.0, %v1278_v38  ;;  %v770_v57 = vsub.f32 0.0, %v738_v14  ;;  %v3100_v38 = vld [vmem:[#allocation22_spill] sm:$0xff] }
 0x174   : > { %v1150_v33 = vadd.f32 %v1118_v47, %v3081_v45  ;;  %v1955_v31 = vpop.eup %1954  ;;  %v1038_v6 = vmul.f32 0.5, %v1006_v56  ;;  %v1230_v12 = vmul.f32 %v1006_v56, %v1006_v56  ;;  %1964 = vlog2.f32 %v1006_v56 }
 0x175   : > { %v904_v50 = vmul.f32 0.6931472, %v1953_v4  ;;  %v880_v49 = vadd.f32 1.0, %v1955_v31  ;;  %1966 = vpow2.f32 %v843_v15  ;;  %v3098_v26 = vunpack.c.h.bf16 %v3085_v21 }
 0x176   : > { %1182 = vst [vmem:[%s2474_s10 + $0x38] sm:$0xff] %v1150_v33  ;;  %v1294_v1 = vadd.f32 %v2671_v36, %v1230_v12  ;;  %v2742_v48 = vadd.f32 -5.0, %v658_v51  ;;  %v704_v11 = vmax.f32 %v2636_v5, 0.0  ;;  %v2747_v41 = vmul.f32 %v3099_v59, %v3099_v59  ;;  %v2760_v51 = vld [vmem:[%s2211_s30 + $0x68] sm:$0xff]  }
 0x177   : > { %v1134_v45 = vmul.f32 %v3098_v26, %v1038_v6  ;;  %v959_v23 = vadd.f32 %v904_v50, %v703_v28  ;;  %1968 = vlog2.f32 %v880_v49  ;;  %v813_v24 = vmul.f32 1.442695, %v770_v57  ;;  %v3101_v57 = vld [vmem:[#allocation4_spill] sm:$0xff] }
 0x178   : > { %v2753_v36 = vmul.f32 %v3100_v38, %v3100_v38  ;;  %v1342_v15 = vmul.f32 0.5, %v1709_v13  ;;  %v754_v5 = vand.u32 2147483647, %v2742_v48  ;;  %v643_v14 = vadd.f32 %v2690_v52, %v2498_v29 }
 0x179   : > { %v1166_v32 = vadd.f32 %v1134_v45, %v3084_v30  ;;  %v991_v47 = vadd.f32 1e-06, %v959_v23  ;;  %v1957_v56 = vpop.eup %1956  ;;  %1970 = vpow2.f32 %v813_v24  ;;  %v1725_v28 = vadd.f32 -1.0, %v1294_v1 }
 0x17a   : > { %v1959_v4 = vpop.eup %1958  ;;  %v1382_v33 = vmul.f32 0.6931472, %v1957_v56  ;;  %v786_v12 = vsub.f32 0.0, %v754_v5  ;;  %v2762_v50 = vadd.f32 -5.0, %v643_v14  ;;  %v3102_v26 = vunpack.c.l.bf16 %v3101_v57 }
 0x17b   : > { %1198 = vst [vmem:[%s2474_s10 + $0xb8] sm:$0xff] %v1166_v32  ;;  %v1023_v30 = vmul.f32 0.5, %v991_v47  ;;  %v1215_v16 = vmul.f32 %v991_v47, %v991_v47  ;;  %v1961_v31 = vpop.eup %1960  ;;  %1972 = vlog2.f32 %v991_v47  ;;  %v936_v6 = vmul.f32 0.6931472, %v1959_v4 }
 0x17c   : > { %v1963_v13 = vpop.eup %1962  ;;  %v1438_v49 = vsub.f32 %v1342_v15, %v1382_v33  ;;  %v865_v23 = vadd.f32 1.0, %v1961_v31  ;;  %v1790_v32 = vunpack.c.l.bf16 %v2760_v51  ;;  %v845_v56 = vmul.f32 1.442695, %v786_v12 }
 0x17d   : > { %v1119_v45 = vmul.f32 %v3102_v26, %v1023_v30  ;;  %v1279_v29 = vadd.f32 %v2685_v63, %v1215_v16  ;;  %v975_v1 = vadd.f32 %v936_v6, %v719_v27  ;;  %v906_v24 = vmul.f32 0.6931472, %v1963_v13 }
 0x17e   : > { %v1965_v21 = vpop.eup %1964  ;;  %v1358_v47 = vmul.f32 0.5, %v1725_v28  ;;  %1974 = vlog2.f32 %v865_v23  ;;  %v1473_v63 = vsel %vm1465_vm1, %v1438_v49, 0.0  ;;  %v739_v30 = vand.u32 2147483647, %v2762_v50 }
 0x17f   : > { %v1151_v5 = vadd.f32 %v1119_v45, %v3087_v53  ;;  %v1710_v14 = vadd.f32 -1.0, %v1279_v29  ;;  %v1967_v4 = vpop.eup %1966  ;;  %v1414_v15 = vmul.f32 0.6931472, %v1965_v21  ;;  %v1007_v33 = vadd.f32 1e-06, %v975_v1 }
 0x180   : > { %v960_v19 = vadd.f32 %v906_v24, %v704_v11  ;;  %1976 = vpow2.f32 %v845_v56  ;;  %v881_v27 = vadd.f32 1.0, %v1967_v4  ;;  %v659_v16 = vadd.f32 %v2690_v52, %v2500_v42 }
 0x181   : > { %1183 = vst [vmem:[%s2474_s10 + $0x40] sm:$0xff] %v1151_v5  ;;  %v1969_v28 = vpop.eup %1968  ;;  %v1454_v31 = vsub.f32 %v1358_v47, %v1414_v15  ;;  %v1039_v53 = vmul.f32 0.5, %v1007_v33  ;;  %v1231_v6 = vmul.f32 %v1007_v33, %v1007_v33  ;;  %1978 = vlog2.f32 %v1007_v33 }
 0x182   : > { %v992_v12 = vadd.f32 1e-06, %v960_v19  ;;  %v938_v21 = vmul.f32 0.6931472, %v1969_v28  ;;  %1980 = vlog2.f32 %v881_v27  ;;  %v771_v11 = vsub.f32 0.0, %v739_v30 }
 0x183   : > { %v1971_v13 = vpop.eup %1970  ;;  %v1489_v49 = vsel %vm1465_vm1, %v1454_v31, 0.0  ;;  %v1343_v26 = vmul.f32 0.5, %v1710_v14  ;;  %v3103_v45 = vunpack.c.l.bf16 %v2289_v46  ;;  %v1295_v42 = vadd.f32 %v2699_v58, %v1231_v6  ;;  %v3106_v31 = vld [vmem:[#allocation25_spill] sm:$0xff] }
 0x184   : > { %v2780_v23 = vadd.f32 %v1489_v49, %v1473_v63  ;;  %v1024_v1 = vmul.f32 0.5, %v992_v12  ;;  %v1216_v24 = vmul.f32 %v992_v12, %v992_v12  ;;  %1982 = vlog2.f32 %v992_v12 }
 0x185   : > { %v1135_v29 = vmul.f32 %v3103_v45, %v1039_v53  ;;  %v1973_v19 = vpop.eup %1972  ;;  %v3104_v47 = vmax.f32 %v2664_v10, 0.0  ;;  %v866_v4 = vadd.f32 1.0, %v1971_v13  ;;  %v2785_v15 = vadd.f32 -5.0, %v659_v16 }
 0x186   : > { %v1384_v14 = vmul.f32 0.6931472, %v1973_v19  ;;  %v3105_v33 = vunpack.c.h.bf16 %v3101_v57  ;;  %v1280_v58 = vadd.f32 %v2713_v43, %v1216_v24  ;;  %v815_v63 = vmul.f32 1.442695, %v771_v11 }
 0x187   : > { %v1167_v56 = vadd.f32 %v1135_v29, %v3090_v60  ;;  %v976_v5 = vadd.f32 %v938_v21, %v3104_v47  ;;  %v705_v28 = vmax.f32 %v2701_v61, 0.0  ;;  %v2794_v60 = vmul.f32 %v3106_v31, %v3106_v31 }
 0x188   : > { %v1120_v27 = vmul.f32 %v3105_v33, %v1024_v1  ;;  %1984 = vlog2.f32 %v866_v4  ;;  %v1975_v10 = vpop.eup %1974  ;;  %v1439_v16 = vsub.f32 %v1343_v26, %v1384_v14  ;;  %v1726_v53 = vadd.f32 -1.0, %v1295_v42 }
 0x189   : > { %1199 = vst [vmem:[%s2474_s10 + $0xc0] sm:$0xff] %v1167_v56  ;;  %v1008_v30 = vadd.f32 1e-06, %v976_v5  ;;  %1986 = vpow2.f32 %v815_v63  ;;  %v908_v21 = vmul.f32 0.6931472, %v1975_v10  ;;  %v1711_v11 = vadd.f32 -1.0, %v1280_v58 }
 0x18a   : > { %v1152_v6 = vadd.f32 %v1120_v27, %v3093_v40  ;;  %v1977_v57 = vpop.eup %1976  ;;  %v721_v61 = vmax.f32 %v2703_v0, 0.0  ;;  %v755_v49 = vand.u32 2147483647, %v2785_v15  ;;  %v3107_v29 = vunpack.c.h.bf16 %v2289_v46 }
 0x18b   : > { %v1040_v12 = vmul.f32 0.5, %v1008_v30  ;;  %v1232_v43 = vmul.f32 %v1008_v30, %v1008_v30  ;;  %1988 = vlog2.f32 %v1008_v30  ;;  %v882_v13 = vadd.f32 1.0, %v1977_v57  ;;  %v1979_v45 = vpop.eup %1978 }
 0x18c   : > { %1184 = vst [vmem:[%s2474_s10 + $0x48] sm:$0xff] %v1152_v6  ;;  %v961_v40 = vadd.f32 %v908_v21, %v705_v28  ;;  %v1759_v1 = vunpack.c.h.bf16 %v2599_v54  ;;  %v1981_v24 = vpop.eup %1980  ;;  %v1359_v19 = vmul.f32 0.5, %v1726_v53  ;;  %v1416_v56 = vmul.f32 0.6931472, %v1979_v45 }
 0x18d   : > { %v1136_v26 = vmul.f32 %v3107_v29, %v1040_v12  ;;  %v1296_v42 = vadd.f32 %v2719_v37, %v1232_v43  ;;  %1990 = vlog2.f32 %v882_v13  ;;  %v787_v47 = vsub.f32 0.0, %v755_v49 }
 0x18e   : > { %v1474_v0 = vsel %vm1465_vm1, %v1439_v16, 0.0  ;;  %v993_v4 = vadd.f32 1e-06, %v961_v40  ;;  %v940_v14 = vmul.f32 0.6931472, %v1981_v24  ;;  %v1983_v46 = vpop.eup %1982  ;;  %v1455_v33 = vsub.f32 %v1359_v19, %v1416_v56 }
 0x18f   : > { %v1168_v5 = vadd.f32 %v1136_v26, %v3094_v35  ;;  %v1344_v27 = vmul.f32 0.5, %v1711_v11  ;;  %v847_v37 = vmul.f32 1.442695, %v787_v47  ;;  %v644_v58 = vadd.f32 %v2690_v52, %v2511_v62 }
 0x190   : > { %v1386_v63 = vmul.f32 0.6931472, %v1983_v46  ;;  %v1727_v30 = vadd.f32 -1.0, %v1296_v42  ;;  %v1025_v28 = vmul.f32 0.5, %v993_v4  ;;  %v1217_v10 = vmul.f32 %v993_v4, %v993_v4 }
 0x191   : > { %1200 = vst [vmem:[%s2474_s10 + $0xc8] sm:$0xff] %v1168_v5  ;;  %v1490_v53 = vsel %vm1465_vm1, %v1455_v33, 0.0  ;;  %1992 = vlog2.f32 %v993_v4  ;;  %v977_v16 = vadd.f32 %v940_v14, %v721_v61  ;;  %v2812_v35 = vadd.f32 -5.0, %v644_v58 }
 0x192   : > { %v1985_v6 = vpop.eup %1984  ;;  %v1506_v57 = vadd.f32 %v1490_v53, %v1474_v0  ;;  %v1440_v12 = vsub.f32 %v1344_v27, %v1386_v63  ;;  %v3108_v43 = vunpack.c.l.bf16 %v2599_v54  ;;  %v1281_v62 = vadd.f32 %v2747_v41, %v1217_v10 }
 0x193   : > { %v1987_v11 = vpop.eup %1986  ;;  %v1009_v13 = vadd.f32 1e-06, %v977_v16  ;;  %v706_v49 = vmax.f32 %v2721_v39, 0.0  ;;  %v910_v45 = vmul.f32 0.6931472, %v1985_v6  ;;  %1994 = vpow2.f32 %v847_v37 }
 0x194   : > { %v1121_v21 = vmul.f32 %v3108_v43, %v1025_v28  ;;  %v2819_v61 = vadd.f32 %v1506_v57, %v2544_v55  ;;  %v1360_v26 = vmul.f32 0.5, %v1727_v30  ;;  %v1712_v40 = vadd.f32 -1.0, %v1281_v62 }
 0x195   : > { %v1989_v29 = vpop.eup %1988  ;;  %v1041_v19 = vmul.f32 0.5, %v1009_v13  ;;  %v1233_v56 = vmul.f32 %v1009_v13, %v1009_v13  ;;  %1996 = vlog2.f32 %v1009_v13  ;;  %v962_v41 = vadd.f32 %v910_v45, %v706_v49  ;;  %v3109_v49 = vld [vmem:[#allocation26_spill] sm:$0xff] }
 0x196   : > { %v1153_v42 = vadd.f32 %v1121_v21, %v3099_v59  ;;  %v1418_v24 = vmul.f32 0.6931472, %v1989_v29  ;;  %v722_v47 = vmax.f32 %v2742_v48, 0.0  ;;  %v867_v0 = vadd.f32 1.0, %v1987_v11 }
 0x197   : > { %v740_v39 = vand.u32 2147483647, %v2812_v35  ;;  %v1991_v5 = vpop.eup %1990  ;;  %v1475_v55 = vsel %vm1465_vm1, %v1440_v12, 0.0  ;;  %v1137_v59 = vmul.f32 %v1790_v32, %v1041_v19  ;;  %v1297_v14 = vadd.f32 %v2753_v36, %v1233_v56 }
 0x198   : > { %1185 = vst [vmem:[%s2474_s10 + $0x50] sm:$0xff] %v1153_v42  ;;  %v1456_v4 = vsub.f32 %v1360_v26, %v1418_v24  ;;  %v994_v46 = vadd.f32 1e-06, %v962_v41  ;;  %v942_v33 = vmul.f32 0.6931472, %v1991_v5  ;;  %1998 = vlog2.f32 %v867_v0 }
 0x199   : > { %v772_v27 = vsub.f32 0.0, %v740_v39  ;;  %v1345_v37 = vmul.f32 0.5, %v1712_v40  ;;  %v1169_v58 = vadd.f32 %v1137_v59, %v3100_v38  ;;  %v660_v63 = vadd.f32 %v2690_v52, %v2513_v44 }
 0x19a   : > { %v1491_v48 = vsel %vm1465_vm1, %v1456_v4, 0.0  ;;  %v1026_v28 = vmul.f32 0.5, %v994_v46  ;;  %v1218_v10 = vmul.f32 %v994_v46, %v994_v46  ;;  %2000 = vlog2.f32 %v994_v46  ;;  %v2859_v46 = vld [vmem:[%s2211_s30 + $0x30] sm:$0xff]  }
 0x19b   : > { %v1507_v30 = vadd.f32 %v1491_v48, %v1475_v55  ;;  %v1993_v32 = vpop.eup %1992  ;;  %1201 = vst [vmem:[%s2474_s10 + $0xd0] sm:$0xff] %v1169_v58  ;;  %v1728_v36 = vadd.f32 -1.0, %v1297_v14  ;;  %v978_v53 = vadd.f32 %v942_v33, %v722_v47  ;;  %v817_v16 = vmul.f32 1.442695, %v772_v27 }
 0x19c   : > { %v2836_v6 = vadd.f32 -5.0, %v660_v63  ;;  %v1388_v12 = vmul.f32 0.6931472, %v1993_v32  ;;  %v1122_v38 = vmul.f32 %v1759_v1, %v1026_v28  ;;  %v1282_v44 = vadd.f32 %v2794_v60, %v1218_v10 }
 0x19d   : > { %v2839_v57 = vadd.f32 %v1507_v30, %v2562_v2  ;;  %v1995_v43 = vpop.eup %1994  ;;  %v1010_v21 = vadd.f32 1e-06, %v978_v53  ;;  %v1791_v62 = vunpack.c.h.bf16 %v2760_v51  ;;  %2002 = vpow2.f32 %v817_v16 }
 0x19e   : > { %v756_v11 = vand.u32 2147483647, %v2836_v6  ;;  %v1441_v13 = vsub.f32 %v1345_v37, %v1388_v12  ;;  %v1266_v45 = vmul.f32 %v3109_v49, %v3109_v49  ;;  %v1154_v2 = vadd.f32 %v1122_v38, %v3106_v31 }
 0x19f   : > { %v883_v29 = vadd.f32 1.0, %v1995_v43  ;;  %v1997_v26 = vpop.eup %1996  ;;  %v1042_v54 = vmul.f32 0.5, %v1010_v21  ;;  %v1234_v1 = vmul.f32 %v1010_v21, %v1010_v21  ;;  %2004 = vlog2.f32 %v1010_v21 }
 0x1a0   : > { %v788_v60 = vsub.f32 0.0, %v756_v11  ;;  %v1361_v42 = vmul.f32 0.5, %v1728_v36  ;;  %v1420_v40 = vmul.f32 0.6931472, %v1997_v26  ;;  %1186 = vst [vmem:[%s2474_s10 + $0x58] sm:$0xff] %v1154_v2  ;;  %v1713_v24 = vadd.f32 -1.0, %v1282_v44 }
 0x1a1   : > { %2006 = vlog2.f32 %v883_v29  ;;  %v1138_v51 = vmul.f32 %v1791_v62, %v1042_v54  ;;  %v1298_v19 = vadd.f32 %v1266_v45, %v1234_v1  ;;  %v1476_v31 = vsel %vm1465_vm1, %v1441_v13, 0.0  ;;  %v2880_v1 = vld [vmem:[%s2211_s30 + $0x70] sm:$0xff]  }
 0x1a2   : > { %v849_v56 = vmul.f32 1.442695, %v788_v60  ;;  %v1999_v41 = vpop.eup %1998  ;;  %v1457_v47 = vsub.f32 %v1361_v42, %v1420_v40  ;;  %v645_v0 = vadd.f32 %v2690_v52, %v2531_v3  ;;  %v707_v5 = vmax.f32 %v2762_v50, 0.0  ;;  %v3110_v50 = vld [vmem:[#allocation29_spill] sm:$0xff] }
 0x1a3   : > { %v1170_v39 = vadd.f32 %v1138_v51, %v3109_v49  ;;  %v912_v55 = vmul.f32 0.6931472, %v1999_v41  ;;  %v1346_v14 = vmul.f32 0.5, %v1713_v24  ;;  %v661_v27 = vadd.f32 %v2690_v52, %v2533_v18 }
 0x1a4   : > { %2008 = vpow2.f32 %v849_v56  ;;  %v2001_v4 = vpop.eup %2000  ;;  %v1492_v59 = vsel %vm1465_vm1, %v1457_v47, 0.0  ;;  %v2861_v33 = vadd.f32 -5.0, %v645_v0  ;;  %v1729_v37 = vadd.f32 -1.0, %v1298_v19 }
 0x1a5   : > { %v1508_v48 = vadd.f32 %v1492_v59, %v1476_v31  ;;  %v1390_v3 = vmul.f32 0.6931472, %v2001_v4  ;;  %1202 = vst [vmem:[%s2474_s10 + $0xd8] sm:$0xff] %v1170_v39  ;;  %v963_v58 = vadd.f32 %v912_v55, %v707_v5  ;;  %v1251_v63 = vmul.f32 %v3110_v50, %v3110_v50 }
 0x1a6   : > { %v741_v30 = vand.u32 2147483647, %v2861_v33  ;;  %v2869_v28 = vadd.f32 -5.0, %v661_v27  ;;  %v1762_v18 = vunpack.c.l.bf16 %v2859_v46  ;;  %v723_v16 = vmax.f32 %v2785_v15, 0.0 }
 0x1a7   : > { %v2003_v10 = vpop.eup %2002  ;;  %v2872_v32 = vadd.f32 %v1508_v48, %v2585_v9  ;;  %v1442_v36 = vsub.f32 %v1346_v14, %v1390_v3  ;;  %v995_v53 = vadd.f32 1e-06, %v963_v58  ;;  %v1362_v21 = vmul.f32 0.5, %v1729_v37 }
 0x1a8   : > { %v868_v12 = vadd.f32 1.0, %v2003_v10  ;;  %v773_v38 = vsub.f32 0.0, %v741_v30  ;;  %v757_v44 = vand.u32 2147483647, %v2869_v28  ;;  %v646_v42 = vadd.f32 %v2690_v52, %v2547_v17  ;;  %v3111_v17 = vld [vmem:[#allocation30_spill] sm:$0xff] }
 0x1a9   : > { %v2005_v43 = vpop.eup %2004  ;;  %v1027_v62 = vmul.f32 0.5, %v995_v53  ;;  %v1219_v11 = vmul.f32 %v995_v53, %v995_v53  ;;  %2010 = vlog2.f32 %v995_v53  ;;  %v1477_v2 = vsel %vm1465_vm1, %v1442_v36, 0.0 }
 0x1aa   : > { %v1422_v49 = vmul.f32 0.6931472, %v2005_v43  ;;  %2012 = vlog2.f32 %v868_v12  ;;  %v819_v9 = vmul.f32 1.442695, %v773_v38  ;;  %v789_v45 = vsub.f32 0.0, %v757_v44 }
 0x1ab   : > { %v2007_v13 = vpop.eup %2006  ;;  %v1123_v29 = vmul.f32 %v1762_v18, %v1027_v62  ;;  %v1283_v15 = vadd.f32 %v1251_v63, %v1219_v11  ;;  %v2887_v41 = vadd.f32 -5.0, %v646_v42  ;;  %v1794_v0 = vunpack.c.l.bf16 %v2880_v1 }
 0x1ac   : > { %v944_v26 = vmul.f32 0.6931472, %v2007_v13  ;;  %v1458_v54 = vsub.f32 %v1362_v21, %v1422_v49  ;;  %2014 = vpow2.f32 %v819_v9  ;;  %v851_v60 = vmul.f32 1.442695, %v789_v45 }
 0x1ad   : > { %v1155_v24 = vadd.f32 %v1123_v29, %v3110_v50  ;;  %v662_v39 = vadd.f32 %v2690_v52, %v2549_v34  ;;  %v1267_v5 = vmul.f32 %v3111_v17, %v3111_v17  ;;  %v1714_v55 = vadd.f32 -1.0, %v1283_v15 }
 0x1ae   : > { %v2009_v40 = vpop.eup %2008  ;;  %v979_v51 = vadd.f32 %v944_v26, %v723_v16  ;;  %v1493_v19 = vsel %vm1465_vm1, %v1458_v54, 0.0  ;;  %2016 = vpow2.f32 %v851_v60  ;;  %v742_v4 = vand.u32 2147483647, %v2887_v41 }
 0x1af   : > { %v884_v56 = vadd.f32 1.0, %v2009_v40  ;;  %v1509_v31 = vadd.f32 %v1493_v19, %v1477_v2  ;;  %1187 = vst [vmem:[%s2474_s10 + $0x60] sm:$0xff] %v1155_v24  ;;  %v2899_v3 = vadd.f32 -5.0, %v662_v39  ;;  %v1347_v50 = vmul.f32 0.5, %v1714_v55 }
 0x1b0   : > { %v1011_v47 = vadd.f32 1e-06, %v979_v51  ;;  %v774_v48 = vsub.f32 0.0, %v742_v4  ;;  %v708_v36 = vmax.f32 %v2812_v35, 0.0  ;;  %v1763_v62 = vunpack.c.h.bf16 %v2859_v46  ;;  %v3112_v35 = vld [vmem:[#allocation31_spill] sm:$0xff] }
 0x1b1   : > { %2018 = vlog2.f32 %v884_v56  ;;  %v2897_v59 = vadd.f32 %v1509_v31, %v2616_v22  ;;  %v758_v53 = vand.u32 2147483647, %v2899_v3  ;;  %v1252_v45 = vmul.f32 %v3112_v35, %v3112_v35 }
 0x1b2   : > { %v1043_v14 = vmul.f32 0.5, %v1011_v47  ;;  %v1235_v27 = vmul.f32 %v1011_v47, %v1011_v47  ;;  %2020 = vlog2.f32 %v1011_v47  ;;  %v821_v30 = vmul.f32 1.442695, %v774_v48 }
 0x1b3   : > { %v2011_v37 = vpop.eup %2010  ;;  %v790_v44 = vsub.f32 0.0, %v758_v53  ;;  %v724_v2 = vmax.f32 %v2836_v6, 0.0  ;;  %v1795_v31 = vunpack.c.h.bf16 %v2880_v1 }
 0x1b4   : > { %v1139_v58 = vmul.f32 %v1794_v0, %v1043_v14  ;;  %v1299_v34 = vadd.f32 %v1267_v5, %v1235_v27  ;;  %v2013_v52 = vpop.eup %2012  ;;  %v1392_v63 = vmul.f32 0.6931472, %v2011_v37  ;;  %2022 = vpow2.f32 %v821_v30 }
 0x1b5   : > { %v914_v22 = vmul.f32 0.6931472, %v2013_v52  ;;  %v853_v49 = vmul.f32 1.442695, %v790_v44 }
 0x1b6   : > { %v1171_v10 = vadd.f32 %v1139_v58, %v3111_v17  ;;  %v2015_v18 = vpop.eup %2014  ;;  %v1443_v16 = vsub.f32 %v1347_v50, %v1392_v63  ;;  %v1730_v21 = vadd.f32 -1.0, %v1299_v34  ;;  %v3113_v17 = vld [vmem:[#allocation32_spill] sm:$0xff]  ;;  %v709_v34 = vmax.f32 %v2861_v33, 0.0  ;;  %v2921_v50 = vld [vmem:[%s2211_s30 + $0x38] sm:$0xff]  }
 0x1b7   : > { %v964_v12 = vadd.f32 %v914_v22, %v708_v36  ;;  %v869_v38 = vadd.f32 1.0, %v2015_v18  ;;  %v1268_v5 = vmul.f32 %v3113_v17, %v3113_v17  ;;  %v725_v33 = vmax.f32 %v2869_v28, 0.0 }
 0x1b8   : > { %1203 = vst [vmem:[%s2474_s10 + $0xe0] sm:$0xff] %v1171_v10  ;;  %v2017_v43 = vpop.eup %2016  ;;  %v1363_v60 = vmul.f32 0.5, %v1730_v21  ;;  %v1478_v51 = vsel %vm1465_vm1, %v1443_v16, 0.0  ;;  %v1766_v16 = vunpack.c.l.bf16 %v2921_v50  ;;  %v2931_v21 = vld [vmem:[%s2211_s30 + $0x78] sm:$0xff]  }
 0x1b9   : > { %v996_v11 = vadd.f32 1e-06, %v964_v12  ;;  %2024 = vlog2.f32 %v869_v38  ;;  %v885_v13 = vadd.f32 1.0, %v2017_v43 }
 0x1bb   : > { %v2019_v9 = vpop.eup %2018  ;;  %v1028_v15 = vmul.f32 0.5, %v996_v11  ;;  %v1220_v26 = vmul.f32 %v996_v11, %v996_v11  ;;  %2026 = vlog2.f32 %v996_v11  ;;  %v1253_v11 = vmul.f32 %v2522_v8, %v2522_v8 }
 0x1bc   : > { %v2021_v29 = vpop.eup %2020  ;;  %v946_v54 = vmul.f32 0.6931472, %v2019_v9  ;;  %2028 = vlog2.f32 %v885_v13 }
 0x1bd   : > { %v1424_v42 = vmul.f32 0.6931472, %v2021_v29  ;;  %v1124_v46 = vmul.f32 %v1763_v62, %v1028_v15  ;;  %v1284_v40 = vadd.f32 %v1252_v45, %v1220_v26  ;;  %2030 = vpow2.f32 %v853_v49 }
 0x1be   : > { %v980_v24 = vadd.f32 %v946_v54, %v724_v2  ;;  %v2023_v47 = vpop.eup %2022  ;;  %v1269_v2 = vmul.f32 %v2524_v25, %v2524_v25 }
 0x1bf   : > { %v1459_v19 = vsub.f32 %v1363_v60, %v1424_v42  ;;  %v1156_v56 = vadd.f32 %v1124_v46, %v3112_v35  ;;  %v1715_v14 = vadd.f32 -1.0, %v1284_v40  ;;  %v870_v27 = vadd.f32 1.0, %v2023_v47 }
 0x1c0   : > { %v1012_v6 = vadd.f32 1e-06, %v980_v24  ;;  %v1798_v35 = vunpack.c.l.bf16 %v2931_v21  ;;  %v710_v24 = vmax.f32 %v2887_v41, 0.0 }
 0x1c1   : > { %v1494_v0 = vsel %vm1465_vm1, %v1459_v19, 0.0  ;;  %1188 = vst [vmem:[%s2474_s10 + $0x68] sm:$0xff] %v1156_v56  ;;  %v1348_v22 = vmul.f32 0.5, %v1715_v14 }
 0x1c2   : > { %v1510_v39 = vadd.f32 %v1494_v0, %v1478_v51  ;;  %v1044_v55 = vmul.f32 0.5, %v1012_v6  ;;  %v1236_v4 = vmul.f32 %v1012_v6, %v1012_v6  ;;  %2032 = vlog2.f32 %v1012_v6 }
 0x1c3   : > { %v2025_v48 = vpop.eup %2024  ;;  %2034 = vlog2.f32 %v870_v27 }
 0x1c4   : > { %v1518_v37 = vadd.f32 %v1510_v39, %v2649_v7  ;;  %v1140_v1 = vmul.f32 %v1795_v31, %v1044_v55  ;;  %v1300_v58 = vadd.f32 %v1268_v5, %v1236_v4  ;;  %v916_v52 = vmul.f32 0.6931472, %v2025_v48  ;;  %v3114_v4 = vld [vmem:[#allocation5_spill] sm:$0xff] }
 0x1c5   : > { %v2027_v63 = vpop.eup %2026  ;;  %v1767_v55 = vunpack.c.h.bf16 %v2921_v50  ;;  %v3115_v48 = vld [vmem:[#allocation33_spill] sm:$0xff] }
 0x1c6   : > { %v2924_v30 = vadd.f32 %v1518_v37, %v2819_v61  ;;  %v1172_v10 = vadd.f32 %v1140_v1, %v3113_v17  ;;  %v2029_v36 = vpop.eup %2028  ;;  %v1394_v53 = vmul.f32 0.6931472, %v2027_v63  ;;  %v965_v18 = vadd.f32 %v916_v52, %v709_v34 }
 0x1c7   : > { %v2031_v7 = vpop.eup %2030  ;;  %v948_v12 = vmul.f32 0.6931472, %v2029_v36  ;;  %v1731_v44 = vadd.f32 -1.0, %v1300_v58  ;;  %v1254_v37 = vmul.f32 %v3115_v48, %v3115_v48  ;;  %v726_v63 = vmax.f32 %v2899_v3, 0.0 }
 0x1c8   : > { %1204 = vst [vmem:[%s2474_s10 + $0xe8] sm:$0xff] %v1172_v10  ;;  %v1444_v38 = vsub.f32 %v1348_v22, %v1394_v53  ;;  %v997_v43 = vadd.f32 1e-06, %v965_v18  ;;  %v886_v61 = vadd.f32 1.0, %v2031_v7 }
 0x1c9   : > { %v981_v62 = vadd.f32 %v948_v12, %v725_v33  ;;  %v1364_v28 = vmul.f32 0.5, %v1731_v44 }
 0x1ca   : > { %v1029_v13 = vmul.f32 0.5, %v997_v43  ;;  %v1221_v49 = vmul.f32 %v997_v43, %v997_v43  ;;  %2036 = vlog2.f32 %v997_v43  ;;  %v1479_v46 = vsel %vm1465_vm1, %v1444_v38, 0.0  ;;  %v3116_v43 = vld [vmem:[#allocation34_spill] sm:$0xff] }
 0x1cb   : > { %v1013_v9 = vadd.f32 1e-06, %v981_v62  ;;  %2038 = vlog2.f32 %v886_v61  ;;  %v1270_v3 = vmul.f32 %v3116_v43, %v3116_v43 }
 0x1cc   : > { %v2033_v45 = vpop.eup %2032  ;;  %v1125_v29 = vmul.f32 %v1766_v16, %v1029_v13  ;;  %v1285_v15 = vadd.f32 %v1253_v11, %v1221_v49 }
 0x1cd   : > { %v1426_v26 = vmul.f32 0.6931472, %v2033_v45  ;;  %v1045_v54 = vmul.f32 0.5, %v1013_v9  ;;  %v1237_v60 = vmul.f32 %v1013_v9, %v1013_v9  ;;  %2040 = vlog2.f32 %v1013_v9  ;;  %v2035_v42 = vpop.eup %2034 }
 0x1ce   : > { %v1157_v40 = vadd.f32 %v1125_v29, %v2522_v8  ;;  %v918_v6 = vmul.f32 0.6931472, %v2035_v42  ;;  %v1716_v31 = vadd.f32 -1.0, %v1285_v15 }
 0x1cf   : > { %v1460_v51 = vsub.f32 %v1364_v28, %v1426_v26  ;;  %v1141_v19 = vmul.f32 %v1798_v35, %v1045_v54  ;;  %v1301_v56 = vadd.f32 %v1269_v2, %v1237_v60  ;;  %v3117_v28 = vld [vmem:[#allocation15_spill] sm:$0xff] }
 0x1d0   : > { %1189 = vst [vmem:[%s2474_s10 + $0x70] sm:$0xff] %v1157_v40  ;;  %v966_v39 = vadd.f32 %v918_v6, %v710_v24  ;;  %v1349_v14 = vmul.f32 0.5, %v1716_v31 }
 0x1d1   : > { %v1495_v47 = vsel %vm1465_vm1, %v1460_v51, 0.0  ;;  %v1173_v0 = vadd.f32 %v1141_v19, %v2524_v25  ;;  %v1732_v27 = vadd.f32 -1.0, %v1301_v56 }
 0x1d2   : > { %v1511_v17 = vadd.f32 %v1495_v47, %v1479_v46  ;;  %v998_v5 = vadd.f32 1e-06, %v966_v39 }
 0x1d3   : > { %1205 = vst [vmem:[%s2474_s10 + $0xf0] sm:$0xff] %v1173_v0  ;;  %v1365_v18 = vmul.f32 0.5, %v1732_v27 }
 0x1d4   : > { %v2037_v8 = vpop.eup %2036  ;;  %v1519_v41 = vadd.f32 %v1511_v17, %v3114_v4  ;;  %v1030_v34 = vmul.f32 0.5, %v998_v5  ;;  %v1222_v52 = vmul.f32 %v998_v5, %v998_v5  ;;  %2042 = vlog2.f32 %v998_v5 }
 0x1d5   : > { %v2039_v1 = vpop.eup %2038  ;;  %v1396_v58 = vmul.f32 0.6931472, %v2037_v8 }
 0x1d6   : > { %v1523_v25 = vadd.f32 %v1519_v41, %v2839_v57  ;;  %v950_v10 = vmul.f32 0.6931472, %v2039_v1  ;;  %v1126_v22 = vmul.f32 %v1767_v55, %v1030_v34  ;;  %v1286_v53 = vadd.f32 %v1254_v37, %v1222_v52 }
 0x1d7   : > { %v2041_v50 = vpop.eup %2040  ;;  %v1445_v36 = vsub.f32 %v1349_v14, %v1396_v58  ;;  %v1799_v57 = vunpack.c.h.bf16 %v2931_v21 }
 0x1d8   : > { %v1428_v7 = vmul.f32 0.6931472, %v2041_v50  ;;  %v982_v16 = vadd.f32 %v950_v10, %v726_v63  ;;  %v1158_v33 = vadd.f32 %v1126_v22, %v3115_v48  ;;  %v1717_v61 = vadd.f32 -1.0, %v1286_v53 }
 0x1d9   : > { %v1480_v12 = vsel %vm1465_vm1, %v1445_v36, 0.0 }
 0x1da   : > { %v1461_v38 = vsub.f32 %v1365_v18, %v1428_v7  ;;  %v1014_v44 = vadd.f32 1e-06, %v982_v16  ;;  %1190 = vst [vmem:[%s2474_s10 + $0x78] sm:$0xff] %v1158_v33  ;;  %v1350_v21 = vmul.f32 0.5, %v1717_v61 }
 0x1dc   : > { %v1496_v62 = vsel %vm1465_vm1, %v1461_v38, 0.0  ;;  %v1046_v11 = vmul.f32 0.5, %v1014_v44  ;;  %v1238_v13 = vmul.f32 %v1014_v44, %v1014_v44  ;;  %2044 = vlog2.f32 %v1014_v44 }
 0x1dd   : > { %v1512_v49 = vadd.f32 %v1496_v62, %v1480_v12 }
 0x1de   : > { %v1142_v9 = vmul.f32 %v1799_v57, %v1046_v11  ;;  %v1302_v35 = vadd.f32 %v1270_v3, %v1238_v13  ;;  %v2043_v45 = vpop.eup %2042 }
 0x1df   : > { %v1520_v2 = vadd.f32 %v1512_v49, %v3117_v28  ;;  %v1398_v29 = vmul.f32 0.6931472, %v2043_v45 }
 0x1e0   : > { %v1174_v15 = vadd.f32 %v1142_v9, %v3116_v43  ;;  %v1733_v42 = vadd.f32 -1.0, %v1302_v35 }
 0x1e1   : > { %v1524_v26 = vadd.f32 %v1520_v2, %v2872_v32  ;;  %v1446_v54 = vsub.f32 %v1350_v21, %v1398_v29 }
 0x1e2   : > { %1206 = vst [vmem:[%s2474_s10 + $0xf8] sm:$0xff] %v1174_v15  ;;  %v1366_v40 = vmul.f32 0.5, %v1733_v42 }
 0x1e3   : > { %v1526_v60 = vadd.f32 %v1524_v26, %v2924_v30  ;;  %v1481_v51 = vsel %vm1465_vm1, %v1446_v54, 0.0 }
 0x1e6   : > { %v2045_v46 = vpop.eup %2044 }
 0x1e7   : > { %v1430_v24 = vmul.f32 0.6931472, %v2045_v46 }
 0x1e9   : > { %v1462_v19 = vsub.f32 %v1366_v40, %v1430_v24 }
 0x1eb   : > { %v1497_v56 = vsel %vm1465_vm1, %v1462_v19, 0.0 }
 0x1ec   : > { %v1513_v6 = vadd.f32 %v1497_v56, %v1481_v51 }
 0x1ee   : > { %v1521_v32 = vadd.f32 %v1513_v6, %v2780_v23 }
 0x1f0   : > { %v1525_v31 = vadd.f32 %v1521_v32, %v2897_v59 }
 0x1f2   : > { %v1527_v30 = vadd.f32 %v1525_v31, %v1523_v25 }
 0x1f4   : > { %v1528_v47 = vadd.f32 %v1527_v30, %v1526_v60 }
 0x1f6   : > { %1529 = vst [vmem:[%s260_s15] sm:$0xff] %v1528_v47 }
 0x1f7 PF: > { %s16_s18 = sadd.s32 1, %s2053_s18  }
 0x1f8   : > { %p13_p5 = scmp.ge.s32.totalorder %s16_s18, 4  }
 0x1fa   :  { %15 = sbr.rel (!%p13_p5) target bundleno = 1 (0x1), region = 81 }

</bundles_post_ra>
